<compile_context>
chip_gen: v7x
topology: tpu7x:2x2x1
jax: 0.10.0
libtpu: 0.0.40
codegen_flags: <defaults>
</compile_context>

<pallas_src>
import functools

import jax
import jax.numpy as jnp
from jax.experimental import pallas as pl
from jax.experimental.pallas import tpu as pltpu


def lstm_fc_kernel(x_ref,                        # (B, T, I)  f32
                   wih0_ref, whh0_ref, b0_ref,   # (I,4H) bf16, (H,4H) bf16, (1,4H) f32
                   wih1_ref, whh1_ref, b1_ref,   # (H,4H) bf16, (H,4H) bf16, (1,4H) f32
                   wfc_ref, bfc_ref,             # (H,Cp) bf16, (1,Cp) f32
                   out_ref):                     # (B, Cp) f32
    """2-layer LSTM over T steps + Linear on the last top-layer hidden state."""
    # TODO(synk): kernel hard-codes num_layers=2 (matches the example config).
    B, T, I = x_ref.shape
    H = whh0_ref.shape[0]

    # --- Hoisted layer-0 input projection for ALL timesteps (one big matmul),
    #     layer-0 bias folded in (single broadcast).  Reshape/cast of x happens
    #     here, inside the kernel, once. ---
    x2d = x_ref[...].reshape(B * T, I).astype(jnp.bfloat16)          # (B*T, I)
    xproj = (jnp.dot(x2d, wih0_ref[...],
                     preferred_element_type=jnp.float32)
             + b0_ref[...])                                          # (B*T, 4H) f32
    xproj = xproj.reshape(B, T, 4 * H)                               # batch-major

    whh0 = whh0_ref[...]
    wih1 = wih1_ref[...]
    whh1 = whh1_ref[...]
    # Hoist layer-1 bias broadcast out of the unrolled loop.
    b1 = jnp.broadcast_to(b1_ref[...], (B, 4 * H))

    def gates_to_state(gates, c):
        # Two full-width EUP pushes (sigmoid + tanh over all 4H lanes), then
        # static slices of the already-activated tensor.  f32 throughout.
        sg = jax.nn.sigmoid(gates)
        th = jnp.tanh(gates)
        i = sg[:, 0 * H:1 * H]
        f = sg[:, 1 * H:2 * H]
        g = th[:, 2 * H:3 * H]
        o = sg[:, 3 * H:4 * H]
        c_new = f * c + i * g
        h_new = o * jnp.tanh(c_new)
        return h_new, c_new

    c0 = jnp.zeros((B, H), jnp.float32)
    c1 = jnp.zeros((B, H), jnp.float32)
    h1b = jnp.zeros((B, H), jnp.bfloat16)
    # Recurrent contributions of the (zero) initial states.
    rec0 = jnp.zeros((B, 4 * H), jnp.float32)    # h0(-1) @ whh0 == 0
    rec1 = b1                                    # h1(-1) @ whh1 + b1 == b1

    # T is small and static -> unrolled Python loop (whole chain visible to the
    # LLO scheduler).
    for t in range(T):
        # Layer 0: precomputed input projection + previous-step recurrence.
        g0 = xproj[:, t, :] + rec0
        h0, c0 = gates_to_state(g0, c0)
        h0b = h0.astype(jnp.bfloat16)            # cast once, reused below

        # Layer 1: split matmuls (no concat); rec1 was issued last step.
        g1 = jnp.dot(h0b, wih1, preferred_element_type=jnp.float32) + rec1
        h1, c1 = gates_to_state(g1, c1)
        h1b = h1.astype(jnp.bfloat16)

        # Recurrent contributions for the NEXT step, issued as soon as this
        # step's states exist so they drain under the next step's layer-0
        # work.  Unused (and DCE'd) after the final step.
        rec0 = jnp.dot(h0b, whh0, preferred_element_type=jnp.float32)
        rec1 = jnp.dot(h1b, whh1, preferred_element_type=jnp.float32) + b1

    # fc on the last timestep's top-layer hidden state (lane-dense Cp=128 cols
    # -> unmasked store).
    out_ref[...] = (jnp.dot(h1b, wfc_ref[...],
                            preferred_element_type=jnp.float32)
                    + bfc_ref[...])


def prepare_params(params, num_classes):
    """One-time weight preprocessing (bf16 casts, fc lane-padding).

    Kept OUT of the per-call forward so the jitted forward contains only the
    pallas_call.
    """
    C_pad = ((num_classes + 127) // 128) * 128
    pad_c = C_pad - num_classes
    return dict(
        wih0=params["wih0"].astype(jnp.bfloat16),
        whh0=params["whh0"].astype(jnp.bfloat16),
        b0=params["b0"],
        wih1=params["wih1"].astype(jnp.bfloat16),
        whh1=params["whh1"].astype(jnp.bfloat16),
        b1=params["b1"],
        wfc=jnp.pad(params["wfc"], ((0, 0), (0, pad_c))).astype(jnp.bfloat16),
        bfc=jnp.pad(params["bfc"], ((0, 0), (0, pad_c))),
    )


@functools.partial(jax.jit, static_argnames=("num_classes",))
def lstm_model_forward(x, prep, num_classes):
    """Forward pass: only the pallas_call (+ final column slice)."""
    B = x.shape[0]
    C_pad = prep["wfc"].shape[1]

    vmem = pl.BlockSpec(memory_space=pltpu.MemorySpace.VMEM)
    out = pl.pallas_call(
        lstm_fc_kernel,
        out_shape=jax.ShapeDtypeStruct((B, C_pad), jnp.float32),
        in_specs=[vmem] * 9,
        out_specs=vmem,
    )(x, prep["wih0"], prep["whh0"], prep["b0"],
      prep["wih1"], prep["whh1"], prep["b1"],
      prep["wfc"], prep["bfc"])
    return out[:, :num_classes]


def lstm_model_ref(x, params):
    """Pure-JAX float32 reference with PyTorch-equivalent semantics."""
    B, T, _ = x.shape
    H = params["whh0"].shape[0]

    def cell(x_t, h, c, wih, whh, b):
        gates = x_t @ wih + h @ whh + b
        i = jax.nn.sigmoid(gates[:, 0 * H:1 * H])
        f = jax.nn.sigmoid(gates[:, 1 * H:2 * H])
        g = jnp.tanh(gates[:, 2 * H:3 * H])
        o = jax.nn.sigmoid(gates[:, 3 * H:4 * H])
        c = f * c + i * g
        h = o * jnp.tanh(c)
        return h, c

    h0 = c0 = h1 = c1 = jnp.zeros((B, H), jnp.float32)
    for t in range(T):
        h0, c0 = cell(x[:, t, :], h0, c0,
                      params["wih0"], params["whh0"], params["b0"])
        h1, c1 = cell(h0, h1, c1,
                      params["wih1"], params["whh1"], params["b1"])
    return h1 @ params["wfc"] + params["bfc"]


def init_params(key, input_size, hidden_size, num_classes):
    """Deterministic init mimicking PyTorch's U(-1/sqrt(H), 1/sqrt(H))."""
    H = hidden_size
    k = 1.0 / jnp.sqrt(jnp.float32(H))
    keys = jax.random.split(key, 10)

    def u(k_, shape):
        return jax.random.uniform(k_, shape, jnp.float32, -k, k)

    # Stored pre-transposed: (in_features, 4H) / (H, 4H) / (H, C).
    return dict(
        wih0=u(keys[0], (input_size, 4 * H)),
        whh0=u(keys[1], (H, 4 * H)),
        b0=u(keys[2], (1, 4 * H)) + u(keys[3], (1, 4 * H)),      # b_ih + b_hh
        wih1=u(keys[4], (H, 4 * H)),
        whh1=u(keys[5], (H, 4 * H)),
        b1=u(keys[6], (1, 4 * H)) + u(keys[7], (1, 4 * H)),
        wfc=jax.random.uniform(keys[8], (H, num_classes), jnp.float32, -k, k),
        bfc=jax.random.uniform(keys[9], (1, num_classes), jnp.float32, -k, k),
    )


if __name__ == "__main__":
    B, T = 2, 8
    input_size, hidden_size, num_layers, num_classes = 16, 32, 2, 4

    key = jax.random.PRNGKey(0)
    k_x, k_p = jax.random.split(key)
    x = jax.random.normal(k_x, (B, T, input_size), jnp.float32)
    params = init_params(k_p, input_size, hidden_size, num_classes)

    # One-time weight preprocessing (outside the per-call forward).
    prep = prepare_params(params, num_classes)
    prep = jax.tree_util.tree_map(jax.block_until_ready, prep)

    out = lstm_model_forward(x, prep, num_classes)
    out = jax.block_until_ready(out)
    assert out.shape == (B, num_classes)

    # bf16 matmul operands in the kernel -> compare to f32 reference with a
    # correspondingly loosened tolerance.
    ref = lstm_model_ref(x, params)
    assert jnp.allclose(out, ref, atol=5e-2, rtol=5e-2), "mismatch vs reference"

    print("KERNEL_OK")
</pallas_src>

<mosaic_0001>
module attributes {stable_mosaic.version = 11 : i64} {
  func.func @lstm_fc_kernel(%arg0: memref<2x8x16xf32, #tpu.memory_space<vmem>>, %arg1: memref<16x128xbf16, #tpu.memory_space<vmem>>, %arg2: memref<32x128xbf16, #tpu.memory_space<vmem>>, %arg3: memref<1x128xf32, #tpu.memory_space<vmem>>, %arg4: memref<32x128xbf16, #tpu.memory_space<vmem>>, %arg5: memref<32x128xbf16, #tpu.memory_space<vmem>>, %arg6: memref<1x128xf32, #tpu.memory_space<vmem>>, %arg7: memref<32x128xbf16, #tpu.memory_space<vmem>>, %arg8: memref<1x128xf32, #tpu.memory_space<vmem>>, %arg9: memref<2x128xf32, #tpu.memory_space<vmem>>) attributes {dimension_semantics = [], scalar_prefetch = 0 : i64, scratch_operands = 0 : i64, tpu.core_type = #tpu.core_type<tc>} {
    %c0 = arith.constant 0 : index
    %c0_0 = arith.constant 0 : index
    %c0_1 = arith.constant 0 : index
    %0 = vector.load %arg0[%c0, %c0_0, %c0_1] : memref<2x8x16xf32, #tpu.memory_space<vmem>>, vector<2x8x16xf32>
    %1 = vector.shape_cast %0 : vector<2x8x16xf32> to vector<16x16xf32>
    %2 = arith.truncf %1 : vector<16x16xf32> to vector<16x16xbf16>
    %c0_2 = arith.constant 0 : index
    %c0_3 = arith.constant 0 : index
    %3 = vector.load %arg1[%c0_2, %c0_3] : memref<16x128xbf16, #tpu.memory_space<vmem>>, vector<16x128xbf16>
    %cst = arith.constant dense<0.000000e+00> : vector<16x128xf32>
    %4 = tpu.matmul %2, %3, %cst {dimension_numbers = #tpu.dot_dimension_numbers<[1], [0], [0], [1], [0, 0, 1, 1], [], []>} : vector<16x16xbf16>, vector<16x128xbf16>, vector<16x128xf32> -> vector<16x128xf32>
    %c0_4 = arith.constant 0 : index
    %c0_5 = arith.constant 0 : index
    %5 = vector.load %arg3[%c0_4, %c0_5] : memref<1x128xf32, #tpu.memory_space<vmem>>, vector<1x128xf32>
    %6 = vector.broadcast %5 : vector<1x128xf32> to vector<16x128xf32>
    %7 = arith.addf %4, %6 : vector<16x128xf32>
    %8 = vector.shape_cast %7 : vector<16x128xf32> to vector<2x8x128xf32>
    %c0_6 = arith.constant 0 : index
    %c0_7 = arith.constant 0 : index
    %9 = vector.load %arg2[%c0_6, %c0_7] : memref<32x128xbf16, #tpu.memory_space<vmem>>, vector<32x128xbf16>
    %c0_8 = arith.constant 0 : index
    %c0_9 = arith.constant 0 : index
    %10 = vector.load %arg4[%c0_8, %c0_9] : memref<32x128xbf16, #tpu.memory_space<vmem>>, vector<32x128xbf16>
    %c0_10 = arith.constant 0 : index
    %c0_11 = arith.constant 0 : index
    %11 = vector.load %arg5[%c0_10, %c0_11] : memref<32x128xbf16, #tpu.memory_space<vmem>>, vector<32x128xbf16>
    %c0_12 = arith.constant 0 : index
    %c0_13 = arith.constant 0 : index
    %12 = vector.load %arg6[%c0_12, %c0_13] : memref<1x128xf32, #tpu.memory_space<vmem>>, vector<1x128xf32>
    %13 = vector.shape_cast %12 : vector<1x128xf32> to vector<1x128xf32>
    %14 = vector.broadcast %13 : vector<1x128xf32> to vector<2x128xf32>
    %cst_14 = arith.constant 0.000000e+00 : f32
    %15 = vector.broadcast %cst_14 : f32 to vector<2x32xf32>
    %cst_15 = arith.constant 0.000000e+00 : f32
    %16 = vector.broadcast %cst_15 : f32 to vector<2x32xf32>
    %cst_16 = arith.constant 0.000000e+00 : f32
    %17 = vector.broadcast %cst_16 : f32 to vector<2x128xf32>
    %18 = vector.extract_strided_slice %8 {offsets = [0, 0, 0], sizes = [2, 1, 128], strides = [1, 1, 1]} : vector<2x8x128xf32> to vector<2x1x128xf32>
    %19 = vector.shape_cast %18 : vector<2x1x128xf32> to vector<2x128xf32>
    %20 = arith.addf %19, %17 : vector<2x128xf32>
    %21 = arith.negf %20 : vector<2x128xf32>
    %22 = math.exp %21 : vector<2x128xf32>
    %cst_17 = arith.constant 1.000000e+00 : f32
    %23 = vector.broadcast %cst_17 : f32 to vector<2x128xf32>
    %24 = arith.addf %23, %22 : vector<2x128xf32>
    %25 = arith.divf %23, %24 : vector<2x128xf32>
    %26 = math.tanh %20 : vector<2x128xf32>
    %27 = vector.extract_strided_slice %25 {offsets = [0, 0], sizes = [2, 32], strides = [1, 1]} : vector<2x128xf32> to vector<2x32xf32>
    %28 = vector.extract_strided_slice %25 {offsets = [0, 32], sizes = [2, 32], strides = [1, 1]} : vector<2x128xf32> to vector<2x32xf32>
    %29 = vector.extract_strided_slice %26 {offsets = [0, 64], sizes = [2, 32], strides = [1, 1]} : vector<2x128xf32> to vector<2x32xf32>
    %30 = vector.extract_strided_slice %25 {offsets = [0, 96], sizes = [2, 32], strides = [1, 1]} : vector<2x128xf32> to vector<2x32xf32>
    %31 = arith.mulf %28, %15 : vector<2x32xf32>
    %32 = arith.mulf %27, %29 : vector<2x32xf32>
    %33 = arith.addf %31, %32 : vector<2x32xf32>
    %34 = math.tanh %33 : vector<2x32xf32>
    %35 = arith.mulf %30, %34 : vector<2x32xf32>
    %36 = arith.truncf %35 : vector<2x32xf32> to vector<2x32xbf16>
    %cst_18 = arith.constant dense<0.000000e+00> : vector<2x128xf32>
    %37 = tpu.matmul %36, %10, %cst_18 {dimension_numbers = #tpu.dot_dimension_numbers<[1], [0], [0], [1], [0, 0, 1, 1], [], []>} : vector<2x32xbf16>, vector<32x128xbf16>, vector<2x128xf32> -> vector<2x128xf32>
    %38 = arith.addf %37, %14 : vector<2x128xf32>
    %39 = arith.negf %38 : vector<2x128xf32>
    %40 = math.exp %39 : vector<2x128xf32>
    %cst_19 = arith.constant 1.000000e+00 : f32
    %41 = vector.broadcast %cst_19 : f32 to vector<2x128xf32>
    %42 = arith.addf %41, %40 : vector<2x128xf32>
    %43 = arith.divf %41, %42 : vector<2x128xf32>
    %44 = math.tanh %38 : vector<2x128xf32>
    %45 = vector.extract_strided_slice %43 {offsets = [0, 0], sizes = [2, 32], strides = [1, 1]} : vector<2x128xf32> to vector<2x32xf32>
    %46 = vector.extract_strided_slice %43 {offsets = [0, 32], sizes = [2, 32], strides = [1, 1]} : vector<2x128xf32> to vector<2x32xf32>
    %47 = vector.extract_strided_slice %44 {offsets = [0, 64], sizes = [2, 32], strides = [1, 1]} : vector<2x128xf32> to vector<2x32xf32>
    %48 = vector.extract_strided_slice %43 {offsets = [0, 96], sizes = [2, 32], strides = [1, 1]} : vector<2x128xf32> to vector<2x32xf32>
    %49 = arith.mulf %46, %16 : vector<2x32xf32>
    %50 = arith.mulf %45, %47 : vector<2x32xf32>
    %51 = arith.addf %49, %50 : vector<2x32xf32>
    %52 = math.tanh %51 : vector<2x32xf32>
    %53 = arith.mulf %48, %52 : vector<2x32xf32>
    %54 = arith.truncf %53 : vector<2x32xf32> to vector<2x32xbf16>
    %cst_20 = arith.constant dense<0.000000e+00> : vector<2x128xf32>
    %55 = tpu.matmul %36, %9, %cst_20 {dimension_numbers = #tpu.dot_dimension_numbers<[1], [0], [0], [1], [0, 0, 1, 1], [], []>} : vector<2x32xbf16>, vector<32x128xbf16>, vector<2x128xf32> -> vector<2x128xf32>
    %cst_21 = arith.constant dense<0.000000e+00> : vector<2x128xf32>
    %56 = tpu.matmul %54, %11, %cst_21 {dimension_numbers = #tpu.dot_dimension_numbers<[1], [0], [0], [1], [0, 0, 1, 1], [], []>} : vector<2x32xbf16>, vector<32x128xbf16>, vector<2x128xf32> -> vector<2x128xf32>
    %57 = arith.addf %56, %14 : vector<2x128xf32>
    %58 = vector.extract_strided_slice %8 {offsets = [0, 1, 0], sizes = [2, 1, 128], strides = [1, 1, 1]} : vector<2x8x128xf32> to vector<2x1x128xf32>
    %59 = vector.shape_cast %58 : vector<2x1x128xf32> to vector<2x128xf32>
    %60 = arith.addf %59, %55 : vector<2x128xf32>
    %61 = arith.negf %60 : vector<2x128xf32>
    %62 = math.exp %61 : vector<2x128xf32>
    %cst_22 = arith.constant 1.000000e+00 : f32
    %63 = vector.broadcast %cst_22 : f32 to vector<2x128xf32>
    %64 = arith.addf %63, %62 : vector<2x128xf32>
    %65 = arith.divf %63, %64 : vector<2x128xf32>
    %66 = math.tanh %60 : vector<2x128xf32>
    %67 = vector.extract_strided_slice %65 {offsets = [0, 0], sizes = [2, 32], strides = [1, 1]} : vector<2x128xf32> to vector<2x32xf32>
    %68 = vector.extract_strided_slice %65 {offsets = [0, 32], sizes = [2, 32], strides = [1, 1]} : vector<2x128xf32> to vector<2x32xf32>
    %69 = vector.extract_strided_slice %66 {offsets = [0, 64], sizes = [2, 32], strides = [1, 1]} : vector<2x128xf32> to vector<2x32xf32>
    %70 = vector.extract_strided_slice %65 {offsets = [0, 96], sizes = [2, 32], strides = [1, 1]} : vector<2x128xf32> to vector<2x32xf32>
    %71 = arith.mulf %68, %33 : vector<2x32xf32>
    %72 = arith.mulf %67, %69 : vector<2x32xf32>
    %73 = arith.addf %71, %72 : vector<2x32xf32>
    %74 = math.tanh %73 : vector<2x32xf32>
    %75 = arith.mulf %70, %74 : vector<2x32xf32>
    %76 = arith.truncf %75 : vector<2x32xf32> to vector<2x32xbf16>
    %cst_23 = arith.constant dense<0.000000e+00> : vector<2x128xf32>
    %77 = tpu.matmul %76, %10, %cst_23 {dimension_numbers = #tpu.dot_dimension_numbers<[1], [0], [0], [1], [0, 0, 1, 1], [], []>} : vector<2x32xbf16>, vector<32x128xbf16>, vector<2x128xf32> -> vector<2x128xf32>
    %78 = arith.addf %77, %57 : vector<2x128xf32>
    %79 = arith.negf %78 : vector<2x128xf32>
    %80 = math.exp %79 : vector<2x128xf32>
    %cst_24 = arith.constant 1.000000e+00 : f32
    %81 = vector.broadcast %cst_24 : f32 to vector<2x128xf32>
    %82 = arith.addf %81, %80 : vector<2x128xf32>
    %83 = arith.divf %81, %82 : vector<2x128xf32>
    %84 = math.tanh %78 : vector<2x128xf32>
    %85 = vector.extract_strided_slice %83 {offsets = [0, 0], sizes = [2, 32], strides = [1, 1]} : vector<2x128xf32> to vector<2x32xf32>
    %86 = vector.extract_strided_slice %83 {offsets = [0, 32], sizes = [2, 32], strides = [1, 1]} : vector<2x128xf32> to vector<2x32xf32>
    %87 = vector.extract_strided_slice %84 {offsets = [0, 64], sizes = [2, 32], strides = [1, 1]} : vector<2x128xf32> to vector<2x32xf32>
    %88 = vector.extract_strided_slice %83 {offsets = [0, 96], sizes = [2, 32], strides = [1, 1]} : vector<2x128xf32> to vector<2x32xf32>
    %89 = arith.mulf %86, %51 : vector<2x32xf32>
    %90 = arith.mulf %85, %87 : vector<2x32xf32>
    %91 = arith.addf %89, %90 : vector<2x32xf32>
    %92 = math.tanh %91 : vector<2x32xf32>
    %93 = arith.mulf %88, %92 : vector<2x32xf32>
    %94 = arith.truncf %93 : vector<2x32xf32> to vector<2x32xbf16>
    %cst_25 = arith.constant dense<0.000000e+00> : vector<2x128xf32>
    %95 = tpu.matmul %76, %9, %cst_25 {dimension_numbers = #tpu.dot_dimension_numbers<[1], [0], [0], [1], [0, 0, 1, 1], [], []>} : vector<2x32xbf16>, vector<32x128xbf16>, vector<2x128xf32> -> vector<2x128xf32>
    %cst_26 = arith.constant dense<0.000000e+00> : vector<2x128xf32>
    %96 = tpu.matmul %94, %11, %cst_26 {dimension_numbers = #tpu.dot_dimension_numbers<[1], [0], [0], [1], [0, 0, 1, 1], [], []>} : vector<2x32xbf16>, vector<32x128xbf16>, vector<2x128xf32> -> vector<2x128xf32>
    %97 = arith.addf %96, %14 : vector<2x128xf32>
    %98 = vector.extract_strided_slice %8 {offsets = [0, 2, 0], sizes = [2, 1, 128], strides = [1, 1, 1]} : vector<2x8x128xf32> to vector<2x1x128xf32>
    %99 = vector.shape_cast %98 : vector<2x1x128xf32> to vector<2x128xf32>
    %100 = arith.addf %99, %95 : vector<2x128xf32>
    %101 = arith.negf %100 : vector<2x128xf32>
    %102 = math.exp %101 : vector<2x128xf32>
    %cst_27 = arith.constant 1.000000e+00 : f32
    %103 = vector.broadcast %cst_27 : f32 to vector<2x128xf32>
    %104 = arith.addf %103, %102 : vector<2x128xf32>
    %105 = arith.divf %103, %104 : vector<2x128xf32>
    %106 = math.tanh %100 : vector<2x128xf32>
    %107 = vector.extract_strided_slice %105 {offsets = [0, 0], sizes = [2, 32], strides = [1, 1]} : vector<2x128xf32> to vector<2x32xf32>
    %108 = vector.extract_strided_slice %105 {offsets = [0, 32], sizes = [2, 32], strides = [1, 1]} : vector<2x128xf32> to vector<2x32xf32>
    %109 = vector.extract_strided_slice %106 {offsets = [0, 64], sizes = [2, 32], strides = [1, 1]} : vector<2x128xf32> to vector<2x32xf32>
    %110 = vector.extract_strided_slice %105 {offsets = [0, 96], sizes = [2, 32], strides = [1, 1]} : vector<2x128xf32> to vector<2x32xf32>
    %111 = arith.mulf %108, %73 : vector<2x32xf32>
    %112 = arith.mulf %107, %109 : vector<2x32xf32>
    %113 = arith.addf %111, %112 : vector<2x32xf32>
    %114 = math.tanh %113 : vector<2x32xf32>
    %115 = arith.mulf %110, %114 : vector<2x32xf32>
    %116 = arith.truncf %115 : vector<2x32xf32> to vector<2x32xbf16>
    %cst_28 = arith.constant dense<0.000000e+00> : vector<2x128xf32>
    %117 = tpu.matmul %116, %10, %cst_28 {dimension_numbers = #tpu.dot_dimension_numbers<[1], [0], [0], [1], [0, 0, 1, 1], [], []>} : vector<2x32xbf16>, vector<32x128xbf16>, vector<2x128xf32> -> vector<2x128xf32>
    %118 = arith.addf %117, %97 : vector<2x128xf32>
    %119 = arith.negf %118 : vector<2x128xf32>
    %120 = math.exp %119 : vector<2x128xf32>
    %cst_29 = arith.constant 1.000000e+00 : f32
    %121 = vector.broadcast %cst_29 : f32 to vector<2x128xf32>
    %122 = arith.addf %121, %120 : vector<2x128xf32>
    %123 = arith.divf %121, %122 : vector<2x128xf32>
    %124 = math.tanh %118 : vector<2x128xf32>
    %125 = vector.extract_strided_slice %123 {offsets = [0, 0], sizes = [2, 32], strides = [1, 1]} : vector<2x128xf32> to vector<2x32xf32>
    %126 = vector.extract_strided_slice %123 {offsets = [0, 32], sizes = [2, 32], strides = [1, 1]} : vector<2x128xf32> to vector<2x32xf32>
    %127 = vector.extract_strided_slice %124 {offsets = [0, 64], sizes = [2, 32], strides = [1, 1]} : vector<2x128xf32> to vector<2x32xf32>
    %128 = vector.extract_strided_slice %123 {offsets = [0, 96], sizes = [2, 32], strides = [1, 1]} : vector<2x128xf32> to vector<2x32xf32>
    %129 = arith.mulf %126, %91 : vector<2x32xf32>
    %130 = arith.mulf %125, %127 : vector<2x32xf32>
    %131 = arith.addf %129, %130 : vector<2x32xf32>
    %132 = math.tanh %131 : vector<2x32xf32>
    %133 = arith.mulf %128, %132 : vector<2x32xf32>
    %134 = arith.truncf %133 : vector<2x32xf32> to vector<2x32xbf16>
    %cst_30 = arith.constant dense<0.000000e+00> : vector<2x128xf32>
    %135 = tpu.matmul %116, %9, %cst_30 {dimension_numbers = #tpu.dot_dimension_numbers<[1], [0], [0], [1], [0, 0, 1, 1], [], []>} : vector<2x32xbf16>, vector<32x128xbf16>, vector<2x128xf32> -> vector<2x128xf32>
    %cst_31 = arith.constant dense<0.000000e+00> : vector<2x128xf32>
    %136 = tpu.matmul %134, %11, %cst_31 {dimension_numbers = #tpu.dot_dimension_numbers<[1], [0], [0], [1], [0, 0, 1, 1], [], []>} : vector<2x32xbf16>, vector<32x128xbf16>, vector<2x128xf32> -> vector<2x128xf32>
    %137 = arith.addf %136, %14 : vector<2x128xf32>
    %138 = vector.extract_strided_slice %8 {offsets = [0, 3, 0], sizes = [2, 1, 128], strides = [1, 1, 1]} : vector<2x8x128xf32> to vector<2x1x128xf32>
    %139 = vector.shape_cast %138 : vector<2x1x128xf32> to vector<2x128xf32>
    %140 = arith.addf %139, %135 : vector<2x128xf32>
    %141 = arith.negf %140 : vector<2x128xf32>
    %142 = math.exp %141 : vector<2x128xf32>
    %cst_32 = arith.constant 1.000000e+00 : f32
    %143 = vector.broadcast %cst_32 : f32 to vector<2x128xf32>
    %144 = arith.addf %143, %142 : vector<2x128xf32>
    %145 = arith.divf %143, %144 : vector<2x128xf32>
    %146 = math.tanh %140 : vector<2x128xf32>
    %147 = vector.extract_strided_slice %145 {offsets = [0, 0], sizes = [2, 32], strides = [1, 1]} : vector<2x128xf32> to vector<2x32xf32>
    %148 = vector.extract_strided_slice %145 {offsets = [0, 32], sizes = [2, 32], strides = [1, 1]} : vector<2x128xf32> to vector<2x32xf32>
    %149 = vector.extract_strided_slice %146 {offsets = [0, 64], sizes = [2, 32], strides = [1, 1]} : vector<2x128xf32> to vector<2x32xf32>
    %150 = vector.extract_strided_slice %145 {offsets = [0, 96], sizes = [2, 32], strides = [1, 1]} : vector<2x128xf32> to vector<2x32xf32>
    %151 = arith.mulf %148, %113 : vector<2x32xf32>
    %152 = arith.mulf %147, %149 : vector<2x32xf32>
    %153 = arith.addf %151, %152 : vector<2x32xf32>
    %154 = math.tanh %153 : vector<2x32xf32>
    %155 = arith.mulf %150, %154 : vector<2x32xf32>
    %156 = arith.truncf %155 : vector<2x32xf32> to vector<2x32xbf16>
    %cst_33 = arith.constant dense<0.000000e+00> : vector<2x128xf32>
    %157 = tpu.matmul %156, %10, %cst_33 {dimension_numbers = #tpu.dot_dimension_numbers<[1], [0], [0], [1], [0, 0, 1, 1], [], []>} : vector<2x32xbf16>, vector<32x128xbf16>, vector<2x128xf32> -> vector<2x128xf32>
    %158 = arith.addf %157, %137 : vector<2x128xf32>
    %159 = arith.negf %158 : vector<2x128xf32>
    %160 = math.exp %159 : vector<2x128xf32>
    %cst_34 = arith.constant 1.000000e+00 : f32
    %161 = vector.broadcast %cst_34 : f32 to vector<2x128xf32>
    %162 = arith.addf %161, %160 : vector<2x128xf32>
    %163 = arith.divf %161, %162 : vector<2x128xf32>
    %164 = math.tanh %158 : vector<2x128xf32>
    %165 = vector.extract_strided_slice %163 {offsets = [0, 0], sizes = [2, 32], strides = [1, 1]} : vector<2x128xf32> to vector<2x32xf32>
    %166 = vector.extract_strided_slice %163 {offsets = [0, 32], sizes = [2, 32], strides = [1, 1]} : vector<2x128xf32> to vector<2x32xf32>
    %167 = vector.extract_strided_slice %164 {offsets = [0, 64], sizes = [2, 32], strides = [1, 1]} : vector<2x128xf32> to vector<2x32xf32>
    %168 = vector.extract_strided_slice %163 {offsets = [0, 96], sizes = [2, 32], strides = [1, 1]} : vector<2x128xf32> to vector<2x32xf32>
    %169 = arith.mulf %166, %131 : vector<2x32xf32>
    %170 = arith.mulf %165, %167 : vector<2x32xf32>
    %171 = arith.addf %169, %170 : vector<2x32xf32>
    %172 = math.tanh %171 : vector<2x32xf32>
    %173 = arith.mulf %168, %172 : vector<2x32xf32>
    %174 = arith.truncf %173 : vector<2x32xf32> to vector<2x32xbf16>
    %cst_35 = arith.constant dense<0.000000e+00> : vector<2x128xf32>
    %175 = tpu.matmul %156, %9, %cst_35 {dimension_numbers = #tpu.dot_dimension_numbers<[1], [0], [0], [1], [0, 0, 1, 1], [], []>} : vector<2x32xbf16>, vector<32x128xbf16>, vector<2x128xf32> -> vector<2x128xf32>
    %cst_36 = arith.constant dense<0.000000e+00> : vector<2x128xf32>
    %176 = tpu.matmul %174, %11, %cst_36 {dimension_numbers = #tpu.dot_dimension_numbers<[1], [0], [0], [1], [0, 0, 1, 1], [], []>} : vector<2x32xbf16>, vector<32x128xbf16>, vector<2x128xf32> -> vector<2x128xf32>
    %177 = arith.addf %176, %14 : vector<2x128xf32>
    %178 = vector.extract_strided_slice %8 {offsets = [0, 4, 0], sizes = [2, 1, 128], strides = [1, 1, 1]} : vector<2x8x128xf32> to vector<2x1x128xf32>
    %179 = vector.shape_cast %178 : vector<2x1x128xf32> to vector<2x128xf32>
    %180 = arith.addf %179, %175 : vector<2x128xf32>
    %181 = arith.negf %180 : vector<2x128xf32>
    %182 = math.exp %181 : vector<2x128xf32>
    %cst_37 = arith.constant 1.000000e+00 : f32
    %183 = vector.broadcast %cst_37 : f32 to vector<2x128xf32>
    %184 = arith.addf %183, %182 : vector<2x128xf32>
    %185 = arith.divf %183, %184 : vector<2x128xf32>
    %186 = math.tanh %180 : vector<2x128xf32>
    %187 = vector.extract_strided_slice %185 {offsets = [0, 0], sizes = [2, 32], strides = [1, 1]} : vector<2x128xf32> to vector<2x32xf32>
    %188 = vector.extract_strided_slice %185 {offsets = [0, 32], sizes = [2, 32], strides = [1, 1]} : vector<2x128xf32> to vector<2x32xf32>
    %189 = vector.extract_strided_slice %186 {offsets = [0, 64], sizes = [2, 32], strides = [1, 1]} : vector<2x128xf32> to vector<2x32xf32>
    %190 = vector.extract_strided_slice %185 {offsets = [0, 96], sizes = [2, 32], strides = [1, 1]} : vector<2x128xf32> to vector<2x32xf32>
    %191 = arith.mulf %188, %153 : vector<2x32xf32>
    %192 = arith.mulf %187, %189 : vector<2x32xf32>
    %193 = arith.addf %191, %192 : vector<2x32xf32>
    %194 = math.tanh %193 : vector<2x32xf32>
    %195 = arith.mulf %190, %194 : vector<2x32xf32>
    %196 = arith.truncf %195 : vector<2x32xf32> to vector<2x32xbf16>
    %cst_38 = arith.constant dense<0.000000e+00> : vector<2x128xf32>
    %197 = tpu.matmul %196, %10, %cst_38 {dimension_numbers = #tpu.dot_dimension_numbers<[1], [0], [0], [1], [0, 0, 1, 1], [], []>} : vector<2x32xbf16>, vector<32x128xbf16>, vector<2x128xf32> -> vector<2x128xf32>
    %198 = arith.addf %197, %177 : vector<2x128xf32>
    %199 = arith.negf %198 : vector<2x128xf32>
    %200 = math.exp %199 : vector<2x128xf32>
    %cst_39 = arith.constant 1.000000e+00 : f32
    %201 = vector.broadcast %cst_39 : f32 to vector<2x128xf32>
    %202 = arith.addf %201, %200 : vector<2x128xf32>
    %203 = arith.divf %201, %202 : vector<2x128xf32>
    %204 = math.tanh %198 : vector<2x128xf32>
    %205 = vector.extract_strided_slice %203 {offsets = [0, 0], sizes = [2, 32], strides = [1, 1]} : vector<2x128xf32> to vector<2x32xf32>
    %206 = vector.extract_strided_slice %203 {offsets = [0, 32], sizes = [2, 32], strides = [1, 1]} : vector<2x128xf32> to vector<2x32xf32>
    %207 = vector.extract_strided_slice %204 {offsets = [0, 64], sizes = [2, 32], strides = [1, 1]} : vector<2x128xf32> to vector<2x32xf32>
    %208 = vector.extract_strided_slice %203 {offsets = [0, 96], sizes = [2, 32], strides = [1, 1]} : vector<2x128xf32> to vector<2x32xf32>
    %209 = arith.mulf %206, %171 : vector<2x32xf32>
    %210 = arith.mulf %205, %207 : vector<2x32xf32>
    %211 = arith.addf %209, %210 : vector<2x32xf32>
    %212 = math.tanh %211 : vector<2x32xf32>
    %213 = arith.mulf %208, %212 : vector<2x32xf32>
    %214 = arith.truncf %213 : vector<2x32xf32> to vector<2x32xbf16>
    %cst_40 = arith.constant dense<0.000000e+00> : vector<2x128xf32>
    %215 = tpu.matmul %196, %9, %cst_40 {dimension_numbers = #tpu.dot_dimension_numbers<[1], [0], [0], [1], [0, 0, 1, 1], [], []>} : vector<2x32xbf16>, vector<32x128xbf16>, vector<2x128xf32> -> vector<2x128xf32>
    %cst_41 = arith.constant dense<0.000000e+00> : vector<2x128xf32>
    %216 = tpu.matmul %214, %11, %cst_41 {dimension_numbers = #tpu.dot_dimension_numbers<[1], [0], [0], [1], [0, 0, 1, 1], [], []>} : vector<2x32xbf16>, vector<32x128xbf16>, vector<2x128xf32> -> vector<2x128xf32>
    %217 = arith.addf %216, %14 : vector<2x128xf32>
    %218 = vector.extract_strided_slice %8 {offsets = [0, 5, 0], sizes = [2, 1, 128], strides = [1, 1, 1]} : vector<2x8x128xf32> to vector<2x1x128xf32>
    %219 = vector.shape_cast %218 : vector<2x1x128xf32> to vector<2x128xf32>
    %220 = arith.addf %219, %215 : vector<2x128xf32>
    %221 = arith.negf %220 : vector<2x128xf32>
    %222 = math.exp %221 : vector<2x128xf32>
    %cst_42 = arith.constant 1.000000e+00 : f32
    %223 = vector.broadcast %cst_42 : f32 to vector<2x128xf32>
    %224 = arith.addf %223, %222 : vector<2x128xf32>
    %225 = arith.divf %223, %224 : vector<2x128xf32>
    %226 = math.tanh %220 : vector<2x128xf32>
    %227 = vector.extract_strided_slice %225 {offsets = [0, 0], sizes = [2, 32], strides = [1, 1]} : vector<2x128xf32> to vector<2x32xf32>
    %228 = vector.extract_strided_slice %225 {offsets = [0, 32], sizes = [2, 32], strides = [1, 1]} : vector<2x128xf32> to vector<2x32xf32>
    %229 = vector.extract_strided_slice %226 {offsets = [0, 64], sizes = [2, 32], strides = [1, 1]} : vector<2x128xf32> to vector<2x32xf32>
    %230 = vector.extract_strided_slice %225 {offsets = [0, 96], sizes = [2, 32], strides = [1, 1]} : vector<2x128xf32> to vector<2x32xf32>
    %231 = arith.mulf %228, %193 : vector<2x32xf32>
    %232 = arith.mulf %227, %229 : vector<2x32xf32>
    %233 = arith.addf %231, %232 : vector<2x32xf32>
    %234 = math.tanh %233 : vector<2x32xf32>
    %235 = arith.mulf %230, %234 : vector<2x32xf32>
    %236 = arith.truncf %235 : vector<2x32xf32> to vector<2x32xbf16>
    %cst_43 = arith.constant dense<0.000000e+00> : vector<2x128xf32>
    %237 = tpu.matmul %236, %10, %cst_43 {dimension_numbers = #tpu.dot_dimension_numbers<[1], [0], [0], [1], [0, 0, 1, 1], [], []>} : vector<2x32xbf16>, vector<32x128xbf16>, vector<2x128xf32> -> vector<2x128xf32>
    %238 = arith.addf %237, %217 : vector<2x128xf32>
    %239 = arith.negf %238 : vector<2x128xf32>
    %240 = math.exp %239 : vector<2x128xf32>
    %cst_44 = arith.constant 1.000000e+00 : f32
    %241 = vector.broadcast %cst_44 : f32 to vector<2x128xf32>
    %242 = arith.addf %241, %240 : vector<2x128xf32>
    %243 = arith.divf %241, %242 : vector<2x128xf32>
    %244 = math.tanh %238 : vector<2x128xf32>
    %245 = vector.extract_strided_slice %243 {offsets = [0, 0], sizes = [2, 32], strides = [1, 1]} : vector<2x128xf32> to vector<2x32xf32>
    %246 = vector.extract_strided_slice %243 {offsets = [0, 32], sizes = [2, 32], strides = [1, 1]} : vector<2x128xf32> to vector<2x32xf32>
    %247 = vector.extract_strided_slice %244 {offsets = [0, 64], sizes = [2, 32], strides = [1, 1]} : vector<2x128xf32> to vector<2x32xf32>
    %248 = vector.extract_strided_slice %243 {offsets = [0, 96], sizes = [2, 32], strides = [1, 1]} : vector<2x128xf32> to vector<2x32xf32>
    %249 = arith.mulf %246, %211 : vector<2x32xf32>
    %250 = arith.mulf %245, %247 : vector<2x32xf32>
    %251 = arith.addf %249, %250 : vector<2x32xf32>
    %252 = math.tanh %251 : vector<2x32xf32>
    %253 = arith.mulf %248, %252 : vector<2x32xf32>
    %254 = arith.truncf %253 : vector<2x32xf32> to vector<2x32xbf16>
    %cst_45 = arith.constant dense<0.000000e+00> : vector<2x128xf32>
    %255 = tpu.matmul %236, %9, %cst_45 {dimension_numbers = #tpu.dot_dimension_numbers<[1], [0], [0], [1], [0, 0, 1, 1], [], []>} : vector<2x32xbf16>, vector<32x128xbf16>, vector<2x128xf32> -> vector<2x128xf32>
    %cst_46 = arith.constant dense<0.000000e+00> : vector<2x128xf32>
    %256 = tpu.matmul %254, %11, %cst_46 {dimension_numbers = #tpu.dot_dimension_numbers<[1], [0], [0], [1], [0, 0, 1, 1], [], []>} : vector<2x32xbf16>, vector<32x128xbf16>, vector<2x128xf32> -> vector<2x128xf32>
    %257 = arith.addf %256, %14 : vector<2x128xf32>
    %258 = vector.extract_strided_slice %8 {offsets = [0, 6, 0], sizes = [2, 1, 128], strides = [1, 1, 1]} : vector<2x8x128xf32> to vector<2x1x128xf32>
    %259 = vector.shape_cast %258 : vector<2x1x128xf32> to vector<2x128xf32>
    %260 = arith.addf %259, %255 : vector<2x128xf32>
    %261 = arith.negf %260 : vector<2x128xf32>
    %262 = math.exp %261 : vector<2x128xf32>
    %cst_47 = arith.constant 1.000000e+00 : f32
    %263 = vector.broadcast %cst_47 : f32 to vector<2x128xf32>
    %264 = arith.addf %263, %262 : vector<2x128xf32>
    %265 = arith.divf %263, %264 : vector<2x128xf32>
    %266 = math.tanh %260 : vector<2x128xf32>
    %267 = vector.extract_strided_slice %265 {offsets = [0, 0], sizes = [2, 32], strides = [1, 1]} : vector<2x128xf32> to vector<2x32xf32>
    %268 = vector.extract_strided_slice %265 {offsets = [0, 32], sizes = [2, 32], strides = [1, 1]} : vector<2x128xf32> to vector<2x32xf32>
    %269 = vector.extract_strided_slice %266 {offsets = [0, 64], sizes = [2, 32], strides = [1, 1]} : vector<2x128xf32> to vector<2x32xf32>
    %270 = vector.extract_strided_slice %265 {offsets = [0, 96], sizes = [2, 32], strides = [1, 1]} : vector<2x128xf32> to vector<2x32xf32>
    %271 = arith.mulf %268, %233 : vector<2x32xf32>
    %272 = arith.mulf %267, %269 : vector<2x32xf32>
    %273 = arith.addf %271, %272 : vector<2x32xf32>
    %274 = math.tanh %273 : vector<2x32xf32>
    %275 = arith.mulf %270, %274 : vector<2x32xf32>
    %276 = arith.truncf %275 : vector<2x32xf32> to vector<2x32xbf16>
    %cst_48 = arith.constant dense<0.000000e+00> : vector<2x128xf32>
    %277 = tpu.matmul %276, %10, %cst_48 {dimension_numbers = #tpu.dot_dimension_numbers<[1], [0], [0], [1], [0, 0, 1, 1], [], []>} : vector<2x32xbf16>, vector<32x128xbf16>, vector<2x128xf32> -> vector<2x128xf32>
    %278 = arith.addf %277, %257 : vector<2x128xf32>
    %279 = arith.negf %278 : vector<2x128xf32>
    %280 = math.exp %279 : vector<2x128xf32>
    %cst_49 = arith.constant 1.000000e+00 : f32
    %281 = vector.broadcast %cst_49 : f32 to vector<2x128xf32>
    %282 = arith.addf %281, %280 : vector<2x128xf32>
    %283 = arith.divf %281, %282 : vector<2x128xf32>
    %284 = math.tanh %278 : vector<2x128xf32>
    %285 = vector.extract_strided_slice %283 {offsets = [0, 0], sizes = [2, 32], strides = [1, 1]} : vector<2x128xf32> to vector<2x32xf32>
    %286 = vector.extract_strided_slice %283 {offsets = [0, 32], sizes = [2, 32], strides = [1, 1]} : vector<2x128xf32> to vector<2x32xf32>
    %287 = vector.extract_strided_slice %284 {offsets = [0, 64], sizes = [2, 32], strides = [1, 1]} : vector<2x128xf32> to vector<2x32xf32>
    %288 = vector.extract_strided_slice %283 {offsets = [0, 96], sizes = [2, 32], strides = [1, 1]} : vector<2x128xf32> to vector<2x32xf32>
    %289 = arith.mulf %286, %251 : vector<2x32xf32>
    %290 = arith.mulf %285, %287 : vector<2x32xf32>
    %291 = arith.addf %289, %290 : vector<2x32xf32>
    %292 = math.tanh %291 : vector<2x32xf32>
    %293 = arith.mulf %288, %292 : vector<2x32xf32>
    %294 = arith.truncf %293 : vector<2x32xf32> to vector<2x32xbf16>
    %cst_50 = arith.constant dense<0.000000e+00> : vector<2x128xf32>
    %295 = tpu.matmul %276, %9, %cst_50 {dimension_numbers = #tpu.dot_dimension_numbers<[1], [0], [0], [1], [0, 0, 1, 1], [], []>} : vector<2x32xbf16>, vector<32x128xbf16>, vector<2x128xf32> -> vector<2x128xf32>
    %cst_51 = arith.constant dense<0.000000e+00> : vector<2x128xf32>
    %296 = tpu.matmul %294, %11, %cst_51 {dimension_numbers = #tpu.dot_dimension_numbers<[1], [0], [0], [1], [0, 0, 1, 1], [], []>} : vector<2x32xbf16>, vector<32x128xbf16>, vector<2x128xf32> -> vector<2x128xf32>
    %297 = arith.addf %296, %14 : vector<2x128xf32>
    %298 = vector.extract_strided_slice %8 {offsets = [0, 7, 0], sizes = [2, 1, 128], strides = [1, 1, 1]} : vector<2x8x128xf32> to vector<2x1x128xf32>
    %299 = vector.shape_cast %298 : vector<2x1x128xf32> to vector<2x128xf32>
    %300 = arith.addf %299, %295 : vector<2x128xf32>
    %301 = arith.negf %300 : vector<2x128xf32>
    %302 = math.exp %301 : vector<2x128xf32>
    %cst_52 = arith.constant 1.000000e+00 : f32
    %303 = vector.broadcast %cst_52 : f32 to vector<2x128xf32>
    %304 = arith.addf %303, %302 : vector<2x128xf32>
    %305 = arith.divf %303, %304 : vector<2x128xf32>
    %306 = math.tanh %300 : vector<2x128xf32>
    %307 = vector.extract_strided_slice %305 {offsets = [0, 0], sizes = [2, 32], strides = [1, 1]} : vector<2x128xf32> to vector<2x32xf32>
    %308 = vector.extract_strided_slice %305 {offsets = [0, 32], sizes = [2, 32], strides = [1, 1]} : vector<2x128xf32> to vector<2x32xf32>
    %309 = vector.extract_strided_slice %306 {offsets = [0, 64], sizes = [2, 32], strides = [1, 1]} : vector<2x128xf32> to vector<2x32xf32>
    %310 = vector.extract_strided_slice %305 {offsets = [0, 96], sizes = [2, 32], strides = [1, 1]} : vector<2x128xf32> to vector<2x32xf32>
    %311 = arith.mulf %308, %273 : vector<2x32xf32>
    %312 = arith.mulf %307, %309 : vector<2x32xf32>
    %313 = arith.addf %311, %312 : vector<2x32xf32>
    %314 = math.tanh %313 : vector<2x32xf32>
    %315 = arith.mulf %310, %314 : vector<2x32xf32>
    %316 = arith.truncf %315 : vector<2x32xf32> to vector<2x32xbf16>
    %cst_53 = arith.constant dense<0.000000e+00> : vector<2x128xf32>
    %317 = tpu.matmul %316, %10, %cst_53 {dimension_numbers = #tpu.dot_dimension_numbers<[1], [0], [0], [1], [0, 0, 1, 1], [], []>} : vector<2x32xbf16>, vector<32x128xbf16>, vector<2x128xf32> -> vector<2x128xf32>
    %318 = arith.addf %317, %297 : vector<2x128xf32>
    %319 = arith.negf %318 : vector<2x128xf32>
    %320 = math.exp %319 : vector<2x128xf32>
    %cst_54 = arith.constant 1.000000e+00 : f32
    %321 = vector.broadcast %cst_54 : f32 to vector<2x128xf32>
    %322 = arith.addf %321, %320 : vector<2x128xf32>
    %323 = arith.divf %321, %322 : vector<2x128xf32>
    %324 = math.tanh %318 : vector<2x128xf32>
    %325 = vector.extract_strided_slice %323 {offsets = [0, 0], sizes = [2, 32], strides = [1, 1]} : vector<2x128xf32> to vector<2x32xf32>
    %326 = vector.extract_strided_slice %323 {offsets = [0, 32], sizes = [2, 32], strides = [1, 1]} : vector<2x128xf32> to vector<2x32xf32>
    %327 = vector.extract_strided_slice %324 {offsets = [0, 64], sizes = [2, 32], strides = [1, 1]} : vector<2x128xf32> to vector<2x32xf32>
    %328 = vector.extract_strided_slice %323 {offsets = [0, 96], sizes = [2, 32], strides = [1, 1]} : vector<2x128xf32> to vector<2x32xf32>
    %329 = arith.mulf %326, %291 : vector<2x32xf32>
    %330 = arith.mulf %325, %327 : vector<2x32xf32>
    %331 = arith.addf %329, %330 : vector<2x32xf32>
    %332 = math.tanh %331 : vector<2x32xf32>
    %333 = arith.mulf %328, %332 : vector<2x32xf32>
    %334 = arith.truncf %333 : vector<2x32xf32> to vector<2x32xbf16>
    %c0_55 = arith.constant 0 : index
    %c0_56 = arith.constant 0 : index
    %335 = vector.load %arg7[%c0_55, %c0_56] : memref<32x128xbf16, #tpu.memory_space<vmem>>, vector<32x128xbf16>
    %cst_57 = arith.constant dense<0.000000e+00> : vector<2x128xf32>
    %336 = tpu.matmul %334, %335, %cst_57 {dimension_numbers = #tpu.dot_dimension_numbers<[1], [0], [0], [1], [0, 0, 1, 1], [], []>} : vector<2x32xbf16>, vector<32x128xbf16>, vector<2x128xf32> -> vector<2x128xf32>
    %c0_58 = arith.constant 0 : index
    %c0_59 = arith.constant 0 : index
    %337 = vector.load %arg8[%c0_58, %c0_59] : memref<1x128xf32, #tpu.memory_space<vmem>>, vector<1x128xf32>
    %338 = vector.broadcast %337 : vector<1x128xf32> to vector<2x128xf32>
    %339 = arith.addf %336, %338 : vector<2x128xf32>
    %c0_60 = arith.constant 0 : index
    %c0_61 = arith.constant 0 : index
    %340 = vector.load %arg9[%c0_60, %c0_61] : memref<2x128xf32, #tpu.memory_space<vmem>>, vector<2x128xf32>
    tpu.vector_store %arg9[%c0_60, %c0_61], %339 {strides = array<i32>} : memref<2x128xf32, #tpu.memory_space<vmem>>, vector<2x128xf32>,
    return
  }
}

</mosaic_0001>

<bundles_post_ra>
// kernel: lstm_model_forward.1
= control target key start
LH: loop header
LB: loop body
LE: loop exit
PB: predicated region body
PF: predicated region fallthrough
CT: control target
= control target key end

     0   :  { %14 = vsyncpa [#allocation3], 0  ;;  %s3292_s0 = inlined_call_operand.hbm [shape: f32[2,8,16], index: 0, kind: input, shape index: {}]   ;;  %s3293_s1 = inlined_call_operand.vmem [shape: bf16[16,128], index: 1, kind: input, shape index: {}]   ;;  %s3294_s2 = inlined_call_operand.vmem [shape: bf16[32,128], index: 2, kind: input, shape index: {}]   ;;  %s3295_s3 = inlined_call_operand.vmem [shape: f32[1,128], index: 3, kind: input, shape index: {}]   ;;  %s3296_s4 = inlined_call_operand.hbm [shape: bf16[32,128], index: 4, kind: input, shape index: {}]   ;;  %s3297_s5 = inlined_call_operand.hbm [shape: bf16[32,128], index: 5, kind: input, shape index: {}]   ;;  %s3298_s6 = inlined_call_operand.vmem [shape: f32[1,128], index: 6, kind: input, shape index: {}]   ;;  %s3299_s7 = inlined_call_operand.hbm [shape: bf16[32,128], index: 7, kind: input, shape index: {}]   ;;  %s3300_s8 = inlined_call_operand.hbm [shape: f32[1,128], index: 8, kind: input, shape index: {}]   ;;  %s3301_s9 = inlined_call_operand.hbm [shape: f32[2,128], index: 9, kind: output, shape index: {}]  }
   0x1   :  { %15 = vsyncpa [#allocation6], 0 }
   0x2   :  { %16 = vsyncpa [#allocation9], 0 }
   0x3   :  { %17 = vsyncpa [#allocation4], 0  ;;  %s2740_s30 = smov [#allocation5]   ;;  %s2600_s13 = scalar_lea.hbm %s3296_s4, 256 }
   0x4   :  { %s41_s10 = sshll.u32 %s2740_s30, 4  ;;  %p2601_p0 = scmp.ne.s32.totalorder %s3296_s4, %s2600_s13  ;;  %s42_s10 = int_to_ptr.vmem [resolvable:$true] %s41_s10 }
   0x5   :  { %p2604_p1 = scmp.lt.u32.totalorder %s2600_s13, %s3296_s4 }
   0x7   :  { %p2606_p2 = pnand %p2604_p1, %p2601_p0 }
   0x9   :  { %2609 = shalt.err (!%p2606_p2)
}
   0xa   :  { %s2610_s18 = scalar_lea.vmem %s42_s10, 256  ;;  %p2615_p4 = scmp.lt.s32.totalorder %s42_s10, %s42_s10 }
   0xb   :  { %p2611_p3 = scmp.ne.s32.totalorder %s42_s10, %s2610_s18  ;;  %p2616_p5 = scmp.lt.s32.totalorder %s2610_s18, %s2610_s18 }
   0xd   :  { %p2617_p6 = por %p2616_p5, %p2615_p4 }
   0xf   :  { %p2618_p7 = pnand %p2617_p6, %p2611_p3 }
  0x11   :  { %2621 = shalt.err (!%p2618_p7)
}
  0x12   :  { %s2741_s19 = smov 64   ;;  %s2742_s20 = smov 4  }
  0x13   :  { %47 = dma.hbm_to_vmem [thread:$0]  %s3296_s4, 256, %s42_s10, [#allocation6], %s2741_s19, %s2741_s19, %s2742_s20  }
  0x14   :  { %s2743_s23 = smov [#allocation8]   ;;  %s2744_s25 = smov [#allocation2]  }
  0x15   :  { %s67_s24 = sshll.u32 %s2743_s23, 4  ;;  %s23_s26 = sshll.u32 %s2744_s25, 4  ;;  %s68_s24 = int_to_ptr.vmem [resolvable:$true] %s67_s24  ;;  %s24_s26 = int_to_ptr.vmem [resolvable:$true] %s23_s26 }
  0x16   :  { %s2622_s29 = scalar_lea.hbm %s3299_s7, 256 }
  0x17   :  { %p2623_p8 = scmp.ne.s32.totalorder %s3299_s7, %s2622_s29  ;;  %p2626_p9 = scmp.lt.u32.totalorder %s2622_s29, %s3299_s7 }
  0x19   :  { %p2628_p10 = pnand %p2626_p9, %p2623_p8 }
  0x1b   :  { %2631 = shalt.err (!%p2628_p10)
}
  0x1c   :  { %s2632_s4 = scalar_lea.vmem %s68_s24, 256  ;;  %p2637_p12 = scmp.lt.s32.totalorder %s68_s24, %s68_s24 }
  0x1d   :  { %p2633_p11 = scmp.ne.s32.totalorder %s68_s24, %s2632_s4  ;;  %p2638_p13 = scmp.lt.s32.totalorder %s2632_s4, %s2632_s4 }
  0x1f   :  { %p2639_p0 = por %p2638_p13, %p2637_p12 }
  0x21   :  { %p2640_p1 = pnand %p2639_p0, %p2633_p11 }
  0x23   :  { %2643 = shalt.err (!%p2640_p1)
}
  0x24   :  { %73 = dma.hbm_to_vmem [thread:$0]  %s3299_s7, 256, %s68_s24, [#allocation9], %s2741_s19, %s2741_s19, %s2742_s20  }
  0x25   :  { %s2644_s17 = scalar_lea.hbm %s3292_s0, 256 }
  0x26   :  { %p2645_p2 = scmp.ne.s32.totalorder %s3292_s0, %s2644_s17  ;;  %p2648_p3 = scmp.lt.u32.totalorder %s2644_s17, %s3292_s0 }
  0x28   :  { %p2650_p4 = pnand %p2648_p3, %p2645_p2 }
  0x2a   :  { %2653 = shalt.err (!%p2650_p4)
}
  0x2b   :  { %s2654_s25 = scalar_lea.vmem %s24_s26, 256  ;;  %p2659_p6 = scmp.lt.s32.totalorder %s24_s26, %s24_s26 }
  0x2c   :  { %p2655_p5 = scmp.ne.s32.totalorder %s24_s26, %s2654_s25  ;;  %p2660_p7 = scmp.lt.s32.totalorder %s2654_s25, %s2654_s25 }
  0x2e   :  { %p2661_p8 = por %p2660_p7, %p2659_p6 }
  0x30   :  { %p2662_p9 = pnand %p2661_p8, %p2655_p5 }
  0x32   :  { %2665 = shalt.err (!%p2662_p9)
}
  0x33   :  { %s2745_s7 = smov 128   ;;  %s2746_s24 = smov 8  }
  0x34   :  { %29 = dma.hbm_to_vmem [thread:$0]  %s3292_s0, 256, %s24_s26, [#allocation3], %s2745_s7, %s2745_s7, %s2746_s24  }
  0x35   :  { %s2747_s29 = smov [#allocation7]   ;;  %s2748_s11 = smov [#allocation10]  }
  0x36   :  { %s53_s30 = sshll.u32 %s2747_s29, 4  ;;  %s80_s12 = sshll.u32 %s2748_s11, 4  ;;  %s54_s30 = int_to_ptr.vmem [resolvable:$true] %s53_s30  ;;  %s81_s12 = int_to_ptr.vmem [resolvable:$true] %s80_s12 }
  0x37   :  { %s2666_s10 = scalar_lea.hbm %s3297_s5, 256 }
  0x38   :  { %p2667_p10 = scmp.ne.s32.totalorder %s3297_s5, %s2666_s10  ;;  %p2670_p11 = scmp.lt.u32.totalorder %s2666_s10, %s3297_s5 }
  0x3a   :  { %p2672_p12 = pnand %p2670_p11, %p2667_p10 }
  0x3c   :  { %2675 = shalt.err (!%p2672_p12)
}
  0x3d   :  { %s2676_s0 = scalar_lea.vmem %s54_s30, 256  ;;  %p2681_p0 = scmp.lt.s32.totalorder %s54_s30, %s54_s30 }
  0x3e   :  { %p2677_p13 = scmp.ne.s32.totalorder %s54_s30, %s2676_s0  ;;  %p2682_p1 = scmp.lt.s32.totalorder %s2676_s0, %s2676_s0 }
  0x40   :  { %p2683_p2 = por %p2682_p1, %p2681_p0 }
  0x42   :  { %p2684_p3 = pnand %p2683_p2, %p2677_p13 }
  0x44   :  { %2687 = shalt.err (!%p2684_p3)
}
  0x45   :  { %59 = dma.hbm_to_vmem [thread:$0]  %s3297_s5, 256, %s54_s30, [#allocation6], %s2741_s19, %s2741_s19, %s2742_s20  }
  0x46   :  { %s2688_s23 = scalar_lea.hbm %s3300_s8, 16 }
  0x47   :  { %p2689_p4 = scmp.ne.s32.totalorder %s3300_s8, %s2688_s23  ;;  %p2692_p5 = scmp.lt.u32.totalorder %s2688_s23, %s3300_s8 }
  0x49   :  { %p2694_p6 = pnand %p2692_p5, %p2689_p4 }
  0x4b   :  { %2697 = shalt.err (!%p2694_p6)
}
  0x4c   :  { %s2698_s28 = scalar_lea.vmem %s81_s12, 16  ;;  %s2702_s29 = scalar_lea.vmem %s81_s12, 32 }
  0x4d   :  { %p2699_p7 = scmp.ne.s32.totalorder %s81_s12, %s2698_s28  ;;  %p2703_p8 = scmp.lt.s32.totalorder %s81_s12, %s81_s12 }
  0x4e   :  { %p2704_p9 = scmp.lt.s32.totalorder %s2702_s29, %s2698_s28 }
  0x50   :  { %p2705_p10 = por %p2704_p9, %p2703_p8 }
  0x52   :  { %p2706_p11 = pnand %p2705_p10, %p2699_p7 }
  0x54   :  { %2709 = shalt.err (!%p2706_p11)
}
  0x55   :  { %83 = dma.hbm_to_vmem [thread:$0]  %s3300_s8, 16, %s81_s12, [#allocation9]  }
  0x56   :  { %2732 = dma.done.wait [#allocation3], 256  }
  0x57   :  { %2733 = vsyncadd [#allocation3], 4294967040 }
  0x58   :  { %2734 = dma.done.wait [#allocation6], 512  }
  0x59   :  { %2735 = vsyncadd [#allocation6], 4294966784 }
  0x5a   :  { %2736 = dma.done.wait [#allocation9], 272  }
  0x5b   :  { %2737 = vsyncadd [#allocation9], 4294967024  ;;  %v2749_v0 = vmov 0.0   ;;  %vm2750_vm0 = vmmov 0   ;;  %v2392_v1 = vld [vmem:[%s3293_s1] sm:$0xff]   ;;  %v101_v3 = vld [vmem:[#allocation2 + $0x8] sm:$0xff] }
  0x5c   :  { %2154 = vmatprep.subr.bf16.mxu0 %v2749_v0  ;;  %2156 = vmatprep.mubr.msk.bf16.mxu0 %vm2750_vm0, %v2749_v0  ;;  %v100_v2 = vld [vmem:[#allocation2] sm:$0xff]  ;;  %vm118_vm1 = vcmask 130048   ;;  %s2751_s1 = smov 32   ;;  %v2906_v33 = vld [vmem:[#allocation5] sm:$0xff]   ;;  %v2915_v35 = vld [vmem:[#allocation5 + $0x8] sm:$0xff]   ;;  %vm239_vm2 = vcmask 1041409  }
  0x5d   :  { %2160 = vmatprep.subr.bf16.mxu1 %v2749_v0  ;;  %2164 = vmatprep.mubr.msk.bf16.mxu1 %vm2750_vm0, %v2749_v0  ;;  %v102_v4 = vpack.c.bf16 %v101_v3, %v100_v2  ;;  %v2023_v7 = vld [vmem:[%s3295_s3] ss:$0 sm:$0xff]  ;;  %v2920_v36 = vld [vmem:[%s3294_s2 + $0x8] sm:$0xff]   ;;  %vm256_vm3 = vcmask 261120  }
  0x5e   :  { %2155 = vmatpush3.bf16.msra.mxu0 %v2392_v1  ;;  %v2911_v34 = vld [vmem:[%s3294_s2] sm:$0xff]   ;;  %2161 = vmatpush3.bf16.msra.mxu1 %v2906_v33 }
  0x5f   :  { %2168 = vmatprep.subr.bf16.mxu0 %v2749_v0  ;;  %2162 = vmatprep.subr.bf16.mxu1 %v2749_v0  ;;  %v2944_v50 = vld [vmem:[%s3298_s6] ss:$0 sm:$0xff] }
  0x61   :  { %2157 = vmatmul.mubr.msk.bf16.vlgmr.msra.gmra.mrb[0].mxu0 %vm118_vm1, %v102_v4 }
  0x62   :  { %2172 = vmatprep.mubr.msk.bf16.mxu0 %vm2750_vm0, %v2749_v0  ;;  %2169 = vmatpush3.bf16.msra.mxu0 %v2911_v34 }
  0x63   :  { %2170 = vmatprep.subr.bf16.mxu0 %v2749_v0  ;;  %2163 = vmatpush3.bf16.msra.mxu1 %v2915_v35 }
  0x64   :  { %2176 = vmatprep.subr.bf16.mxu1 %v2749_v0 }
  0x66   :  { %2171 = vmatpush3.bf16.msra.mxu0 %v2920_v36 }
  0x67   :  { %2192 = vmatprep.subr.bf16.mxu0 %v2749_v0 }
 0x134   :  { %v156_v5 = vpop.f32.mrb[0].mxu0 }
 0x135   :  { %v2158_v6 = vpop.f32.mrb[1].mxu0  ;;  %v2889_v11 = vadd.f32 %v2023_v7, %v156_v5 }
 0x136   :  { %v159_v8 = vpop.f32.mrb[2].mxu0 }
 0x137   :  { %v2887_v9 = vadd.f32 %v2023_v7, %v159_v8  ;;  %v2159_v10 = vpop.f32.mrb[3].mxu0  ;;  %v2027_v15 = vmul.f32 -1.442695, %v2889_v11 }
 0x139   :  { %2401 = vtanh.f32 %v2887_v9  ;;  %v2028_v14 = vmul.f32 -1.442695, %v2887_v9 }
 0x13a   :  { %2403 = vtanh.f32 %v2889_v11 }
 0x13b   :  { %2405 = vpow2.f32 %v2028_v14 }
 0x13c   :  { %2407 = vpow2.f32 %v2027_v15 }
 0x143   :  { %v2402_v12 = vpop.eup %2401 }
 0x144   :  { %204 = vrot.lane.b32.xlu0 %v2402_v12, %s2741_s19  ;;  %v2404_v13 = vpop.eup %2403 }
 0x145   :  { %v2406_v16 = vpop.eup %2405 }
 0x146   :  { %v191_v17 = vadd.f32 1.0, %v2406_v16  ;;  %v2408_v18 = vpop.eup %2407 }
 0x147   :  { %v190_v19 = vadd.f32 1.0, %v2408_v18 }
 0x148   :  { %202 = vrot.lane.b32.xlu0 %v2404_v13, %s2741_s19  ;;  %2409 = vrcp.f32 %v191_v17 }
 0x149   :  { %2411 = vrcp.f32 %v190_v19 }
 0x152   :  { %v2410_v20 = vpop.eup %2409 }
 0x153   :  { %v2412_v23 = vpop.eup %2411  ;;  %v199_v26 = vmul.f32 0.0, %v2410_v20 }
 0x154   :  { %v198_v29 = vmul.f32 0.0, %v2412_v23 }
 0x1b6   :  { %v205_v21 = vpop.permute.xlu0 %204 }
 0x1b7   :  { %v209_v22 = vmul.f32 %v2410_v20, %v205_v21 }
 0x1b9   :  { %214 = vrot.lane.b32.xlu1 %v209_v22, %s2751_s1 }
 0x1ba   :  { %v203_v24 = vpop.permute.xlu0 %202 }
 0x1bb   :  { %v208_v25 = vmul.f32 %v2412_v23, %v203_v24 }
 0x1bd   :  { %212 = vrot.lane.b32.xlu1 %v208_v25, %s2751_s1 }
 0x22b   :  { %v215_v27 = vpop.permute.xlu1 %214 }
 0x22c   :  { %v2899_v28 = vadd.f32 %v215_v27, %v199_v26 }
 0x22e   :  { %2413 = vtanh.f32 %v2899_v28  ;;  %v458_v25 = vrot.slane %v2899_v28, 7 }
 0x22f   :  { %v213_v30 = vpop.permute.xlu1 %212 }
 0x230   :  { %v2902_v31 = vadd.f32 %v213_v30, %v198_v29 }
 0x232   :  { %2415 = vtanh.f32 %v2902_v31  ;;  %v457_v27 = vrot.slane %v2902_v31, 7 }
 0x238   :  { %v2414_v32 = vpop.eup %2413 }
 0x239   :  { %226 = vrot.lane.b32.xlu0 %v2414_v32, %s2741_s19 }
 0x23c   :  { %v2416_v37 = vpop.eup %2415 }
 0x23d   :  { %224 = vrot.lane.b32.xlu1 %v2416_v37, %s2741_s19 }
 0x2ab   :  { %v227_v38 = vpop.permute.xlu0 %226 }
 0x2ac   :  { %v231_v39 = vmul.f32 %v2410_v20, %v227_v38 }
 0x2ae   :  { %v233_v40 = vpack.c.bf16 %v231_v39, %v231_v39 }
 0x2af   :  { %v225_v41 = vpop.permute.xlu1 %224 }
 0x2b0   :  { %v237_v42 = vunpack.c.l.b16 %v233_v40  ;;  %v230_v43 = vmul.f32 %v2412_v23, %v225_v41  ;;  %v2967_v41 = vld [vmem:[#allocation7] sm:$0xff]  }
 0x2b2   :  { %v232_v44 = vpack.c.bf16 %v230_v43, %v230_v43  ;;  %v238_v45 = vrot.slane %v237_v42, 7  ;;  %v2972_v42 = vld [vmem:[#allocation7 + $0x8] sm:$0xff]  }
 0x2b4   :  { %v236_v46 = vunpack.c.l.b16 %v232_v44 }
 0x2b6   :  { %v240_v47 = vsel %vm239_vm2, %v238_v45, %v236_v46 }
 0x2b7   :  { %v241_v48 = vpack.c.b16 %v240_v47, %v240_v47 }
 0x2b9   :  { %242 = vrot.lane.b32.xlu0 %v241_v48, %s2751_s1 }
 0x32b   :  { %v243_v49 = vpop.permute.xlu0 %242 }
 0x32c   :  { %2165 = vmatmul.mubr.msk.bf16.vlgmr.msra.gmra.mrb[0].mxu1 %vm256_vm3, %v243_v49  ;;  %2173 = vmatmul.mubr.msk.bf16.vlgmr.msra.gmra.mrb[4].mxu0 %vm256_vm3, %v243_v49 }
 0x32d   :  { %2180 = vmatprep.mubr.msk.bf16.mxu1 %vm2750_vm0, %v2749_v0  ;;  %2193 = vmatpush3.bf16.msra.mxu0 %v2911_v34 }
 0x32e   :  { %2194 = vmatprep.subr.bf16.mxu0 %v2749_v0  ;;  %2196 = vmatprep.mubr.msk.bf16.mxu0 %vm2750_vm0, %v2749_v0 }
 0x32f   :  { %2177 = vmatpush3.bf16.msra.mxu1 %v2967_v41 }
 0x330   :  { %2178 = vmatprep.subr.bf16.mxu1 %v2749_v0 }
 0x331   :  { %2195 = vmatpush3.bf16.msra.mxu0 %v2920_v36 }
 0x332   :  { %2200 = vmatprep.subr.bf16.mxu0 %v2749_v0 }
 0x333   :  { %2179 = vmatpush3.bf16.msra.mxu1 %v2972_v42 }
 0x334   :  { %2184 = vmatprep.subr.bf16.mxu1 %v2749_v0 }
 0x3ff   :  { %v294_v51 = vpop.f32.mrb[0].mxu1  ;;  %v371_v52 = vpop.f32.mrb[4].mxu0 }
 0x400   :  { %v295_v53 = vadd.f32 %v2944_v50, %v294_v51  ;;  %v436_v54 = vrot.slane %v371_v52, 7  ;;  %v2166_v55 = vpop.f32.mrb[1].mxu1  ;;  %v2174_v56 = vpop.f32.mrb[5].mxu0  ;;  %v440_v59 = vadd.f32 %v371_v52, %v2887_v9 }
 0x401   :  { %v297_v57 = vpop.f32.mrb[2].mxu1  ;;  %v374_v58 = vpop.f32.mrb[6].mxu0 }
 0x402   :  { %2417 = vtanh.f32 %v295_v53  ;;  %v2167_v60 = vpop.f32.mrb[3].mxu1  ;;  %v2175_v61 = vpop.f32.mrb[7].mxu0  ;;  %v439_v62 = vadd.f32 %v436_v54, %v2889_v11  ;;  %v2032_v3 = vmul.f32 -1.442695, %v295_v53  ;;  %v2040_v4 = vmul.f32 -1.442695, %v440_v59 }
 0x403   :  { %2419 = vtanh.f32 %v440_v59 }
 0x404   :  { %2421 = vtanh.f32 %v439_v62  ;;  %v2039_v5 = vmul.f32 -1.442695, %v439_v62 }
 0x405   :  { %2423 = vpow2.f32 %v2032_v3 }
 0x406   :  { %2425 = vpow2.f32 %v2040_v4 }
 0x407   :  { %2427 = vpow2.f32 %v2039_v5 }
 0x40c   :  { %v2418_v63 = vpop.eup %2417 }
 0x40d   :  { %309 = vrot.lane.b32.xlu1 %v2418_v63, %s2741_s19  ;;  %v2420_v1 = vpop.eup %2419 }
 0x40e   :  { %v2422_v2 = vpop.eup %2421 }
 0x40f   :  { %465 = vrot.lane.b32.xlu0 %v2422_v2, %s2741_s19  ;;  %v2424_v6 = vpop.eup %2423 }
 0x410   :  { %v303_v7 = vadd.f32 1.0, %v2424_v6  ;;  %v2426_v8 = vpop.eup %2425 }
 0x411   :  { %467 = vrot.lane.b32.xlu1 %v2420_v1, %s2741_s19  ;;  %v2428_v10 = vpop.eup %2427  ;;  %v448_v12 = vadd.f32 1.0, %v2426_v8 }
 0x412   :  { %2429 = vrcp.f32 %v303_v7  ;;  %v447_v13 = vadd.f32 1.0, %v2428_v10 }
 0x413   :  { %2431 = vrcp.f32 %v448_v12 }
 0x414   :  { %2433 = vrcp.f32 %v447_v13 }
 0x41c   :  { %v2430_v14 = vpop.eup %2429 }
 0x41d   :  { %v2432_v17 = vpop.eup %2431  ;;  %v307_v23 = vmul.f32 0.0, %v2430_v14 }
 0x41e   :  { %v2434_v19 = vpop.eup %2433  ;;  %v462_v29 = vmul.f32 %v2432_v17, %v458_v25 }
 0x41f   :  { %v461_v30 = vmul.f32 %v2434_v19, %v457_v27 }
 0x47f   :  { %v310_v15 = vpop.permute.xlu1 %309 }
 0x480   :  { %v312_v16 = vmul.f32 %v2430_v14, %v310_v15 }
 0x481   :  { %v466_v20 = vpop.permute.xlu0 %465 }
 0x482   :  { %314 = vrot.lane.b32.xlu0 %v312_v16, %s2751_s1  ;;  %v471_v22 = vmul.f32 %v2434_v19, %v466_v20 }
 0x483   :  { %v468_v18 = vpop.permute.xlu1 %467 }
 0x484   :  { %v472_v21 = vmul.f32 %v2432_v17, %v468_v18  ;;  %475 = vrot.lane.b32.xlu1 %v471_v22, %s2751_s1 }
 0x486   :  { %477 = vrot.lane.b32.xlu0 %v472_v21, %s2751_s1 }
 0x4f4   :  { %v315_v24 = vpop.permute.xlu0 %314 }
 0x4f5   :  { %v2956_v26 = vadd.f32 %v315_v24, %v307_v23 }
 0x4f6   :  { %v476_v37 = vpop.permute.xlu1 %475 }
 0x4f7   :  { %2435 = vtanh.f32 %v2956_v26  ;;  %v2962_v39 = vadd.f32 %v476_v37, %v461_v30 }
 0x4f8   :  { %v478_v32 = vpop.permute.xlu0 %477 }
 0x4f9   :  { %v2960_v38 = vadd.f32 %v478_v32, %v462_v29 }
 0x4fb   :  { %2437 = vtanh.f32 %v2960_v38 }
 0x4fc   :  { %2439 = vtanh.f32 %v2962_v39 }
 0x501   :  { %v2436_v40 = vpop.eup %2435 }
 0x502   :  { %320 = vrot.lane.b32.xlu1 %v2436_v40, %s2741_s19 }
 0x505   :  { %v2438_v28 = vpop.eup %2437 }
 0x506   :  { %v2440_v31 = vpop.eup %2439  ;;  %489 = vrot.lane.b32.xlu1 %v2438_v28, %s2741_s19 }
 0x507   :  { %487 = vrot.lane.b32.xlu0 %v2440_v31, %s2741_s19  ;;  %v683_v31 = vrot.slane %v2962_v39, 7 }
 0x574   :  { %v321_v43 = vpop.permute.xlu1 %320 }
 0x575   :  { %v323_v44 = vmul.f32 %v2430_v14, %v321_v43 }
 0x577   :  { %v324_v45 = vpack.c.bf16 %v323_v44, %v323_v44 }
 0x578   :  { %v490_v46 = vpop.permute.xlu1 %489 }
 0x579   :  { %v488_v47 = vpop.permute.xlu0 %487  ;;  %v494_v48 = vmul.f32 %v2432_v17, %v490_v46  ;;  %378 = vrot.lane.b32.xlu0 %v324_v45, %s2751_s1  ;;  %v684_v45 = vrot.slane %v2960_v38, 7 }
 0x57a   :  { %v493_v49 = vmul.f32 %v2434_v19, %v488_v47 }
 0x57b   :  { %v496_v51 = vpack.c.bf16 %v494_v48, %v494_v48 }
 0x57c   :  { %v495_v52 = vpack.c.bf16 %v493_v49, %v493_v49 }
 0x57d   :  { %v500_v54 = vunpack.c.l.b16 %v496_v51 }
 0x57e   :  { %v499_v53 = vunpack.c.l.b16 %v495_v52 }
 0x580   :  { %v501_v55 = vrot.slane %v499_v53, 1 }
 0x582   :  { %v502_v56 = vsel %vm239_vm2, %v500_v54, %v501_v55 }
 0x583   :  { %v503_v57 = vpack.c.b16 %v502_v56, %v502_v56 }
 0x585   :  { %504 = vrot.lane.b32.xlu1 %v503_v57, %s2751_s1 }
 0x5eb   :  { %v379_v58 = vpop.permute.xlu0 %378 }
 0x5ec   :  { %2181 = vmatmul.mubr.msk.bf16.vlgmr.msra.gmra.mrb[4].mxu1 %vm256_vm3, %v379_v58 }
 0x5ed   :  { %2185 = vmatpush3.bf16.msra.mxu1 %v2906_v33  ;;  %2188 = vmatprep.mubr.msk.bf16.mxu1 %vm2750_vm0, %v2749_v0 }
 0x5ee   :  { %2186 = vmatprep.subr.bf16.mxu1 %v2749_v0 }
 0x5f1   :  { %2187 = vmatpush3.bf16.msra.mxu1 %v2915_v35 }
 0x5f2   :  { %2216 = vmatprep.subr.bf16.mxu1 %v2749_v0 }
 0x5f7   :  { %v505_v59 = vpop.permute.xlu1 %504 }
 0x5f8   :  { %2197 = vmatmul.mubr.msk.bf16.vlgmr.msra.gmra.mrb[8].mxu0 %vm256_vm3, %v505_v59  ;;  %2189 = vmatmul.mubr.msk.bf16.vlgmr.msra.gmra.mrb[4].mxu1 %vm256_vm3, %v505_v59 }
 0x5f9   :  { %2201 = vmatpush3.bf16.msra.mxu0 %v2967_v41  ;;  %2204 = vmatprep.mubr.msk.bf16.mxu0 %vm2750_vm0, %v2749_v0 }
 0x5fa   :  { %2202 = vmatprep.subr.bf16.mxu0 %v2749_v0  ;;  %2217 = vmatpush3.bf16.msra.mxu1 %v2911_v34 }
 0x5fb   :  { %2218 = vmatprep.subr.bf16.mxu1 %v2749_v0  ;;  %2220 = vmatprep.mubr.msk.bf16.mxu1 %vm2750_vm0, %v2749_v0 }
 0x5fd   :  { %2203 = vmatpush3.bf16.msra.mxu0 %v2972_v42 }
 0x5fe   :  { %2208 = vmatprep.subr.bf16.mxu0 %v2749_v0  ;;  %2219 = vmatpush3.bf16.msra.mxu1 %v2920_v36 }
 0x5ff   :  { %2224 = vmatprep.subr.bf16.mxu1 %v2749_v0 }
 0x6cb   :  { %v608_v60 = vpop.f32.mrb[8].mxu0  ;;  %v543_v61 = vpop.f32.mrb[4].mxu1 }
 0x6cc   :  { %v661_v62 = vrot.slane %v608_v60, 6  ;;  %v662_v63 = vrot.slane %v608_v60, 7  ;;  %v2198_v1 = vpop.f32.mrb[9].mxu0  ;;  %v2344_v2 = vadd.f32 %v2944_v50, %v543_v61  ;;  %v2190_v3 = vpop.f32.mrb[5].mxu1 }
 0x6cd   :  { %v611_v4 = vpop.f32.mrb[10].mxu0  ;;  %v546_v5 = vpop.f32.mrb[6].mxu1 }
 0x6ce   :  { %v665_v6 = vadd.f32 %v661_v62, %v2889_v11  ;;  %v666_v7 = vadd.f32 %v662_v63, %v2887_v9  ;;  %2441 = vtanh.f32 %v2344_v2  ;;  %v2199_v8 = vpop.f32.mrb[11].mxu0  ;;  %v2191_v10 = vpop.f32.mrb[7].mxu1  ;;  %v2042_v15 = vmul.f32 -1.442695, %v2344_v2 }
 0x6d0   :  { %2443 = vtanh.f32 %v665_v6  ;;  %v2045_v16 = vmul.f32 -1.442695, %v665_v6  ;;  %v2046_v17 = vmul.f32 -1.442695, %v666_v7 }
 0x6d1   :  { %2445 = vtanh.f32 %v666_v7 }
 0x6d2   :  { %2447 = vpow2.f32 %v2042_v15 }
 0x6d3   :  { %2449 = vpow2.f32 %v2045_v16 }
 0x6d4   :  { %2451 = vpow2.f32 %v2046_v17 }
 0x6d8   :  { %v2442_v12 = vpop.eup %2441 }
 0x6d9   :  { %558 = vrot.lane.b32.xlu0 %v2442_v12, %s2741_s19 }
 0x6da   :  { %v2444_v13 = vpop.eup %2443 }
 0x6db   :  { %691 = vrot.lane.b32.xlu1 %v2444_v13, %s2741_s19  ;;  %v2446_v14 = vpop.eup %2445 }
 0x6dc   :  { %v2448_v18 = vpop.eup %2447 }
 0x6dd   :  { %693 = vrot.lane.b32.xlu0 %v2446_v14, %s2741_s19  ;;  %v2450_v19 = vpop.eup %2449  ;;  %v552_v20 = vadd.f32 1.0, %v2448_v18 }
 0x6de   :  { %v2452_v21 = vpop.eup %2451  ;;  %v673_v22 = vadd.f32 1.0, %v2450_v19 }
 0x6df   :  { %v674_v23 = vadd.f32 1.0, %v2452_v21  ;;  %2453 = vrcp.f32 %v552_v20 }
 0x6e0   :  { %2455 = vrcp.f32 %v673_v22 }
 0x6e1   :  { %2457 = vrcp.f32 %v674_v23 }
 0x6e9   :  { %v2454_v24 = vpop.eup %2453 }
 0x6ea   :  { %v2456_v29 = vpop.eup %2455  ;;  %v556_v43 = vmul.f32 %v2454_v24, %v2956_v26 }
 0x6eb   :  { %v2458_v37 = vpop.eup %2457  ;;  %v687_v46 = vmul.f32 %v2456_v29, %v683_v31 }
 0x6ec   :  { %v688_v51 = vmul.f32 %v2458_v37, %v684_v45 }
 0x74b   :  { %v559_v25 = vpop.permute.xlu0 %558 }
 0x74c   :  { %v561_v27 = vmul.f32 %v2454_v24, %v559_v25 }
 0x74d   :  { %v692_v30 = vpop.permute.xlu1 %691 }
 0x74e   :  { %v697_v32 = vmul.f32 %v2456_v29, %v692_v30  ;;  %563 = vrot.lane.b32.xlu1 %v561_v27, %s2751_s1 }
 0x74f   :  { %v694_v40 = vpop.permute.xlu0 %693 }
 0x750   :  { %701 = vrot.lane.b32.xlu0 %v697_v32, %s2751_s1  ;;  %v698_v28 = vmul.f32 %v2458_v37, %v694_v40 }
 0x752   :  { %703 = vrot.lane.b32.xlu1 %v698_v28, %s2751_s1 }
 0x7c0   :  { %v564_v44 = vpop.permute.xlu1 %563 }
 0x7c1   :  { %v3013_v47 = vadd.f32 %v564_v44, %v556_v43 }
 0x7c2   :  { %v702_v48 = vpop.permute.xlu0 %701 }
 0x7c3   :  { %v3015_v49 = vadd.f32 %v702_v48, %v687_v46  ;;  %2459 = vtanh.f32 %v3013_v47 }
 0x7c4   :  { %v704_v52 = vpop.permute.xlu1 %703 }
 0x7c5   :  { %2461 = vtanh.f32 %v3015_v49  ;;  %v3019_v53 = vadd.f32 %v704_v52, %v688_v51 }
 0x7c7   :  { %2463 = vtanh.f32 %v3019_v53 }
 0x7cd   :  { %v2460_v26 = vpop.eup %2459 }
 0x7ce   :  { %569 = vrot.lane.b32.xlu0 %v2460_v26, %s2741_s19 }
 0x7cf   :  { %v2462_v38 = vpop.eup %2461 }
 0x7d0   :  { %713 = vrot.lane.b32.xlu1 %v2462_v38, %s2741_s19 }
 0x7d1   :  { %v2464_v39 = vpop.eup %2463 }
 0x7d2   :  { %715 = vrot.lane.b32.xlu0 %v2464_v39, %s2741_s19 }
 0x840   :  { %v570_v54 = vpop.permute.xlu0 %569 }
 0x841   :  { %v572_v55 = vmul.f32 %v2454_v24, %v570_v54  ;;  %v910_v54 = vrot.slane %v3015_v49, 7 }
 0x842   :  { %v714_v56 = vpop.permute.xlu1 %713 }
 0x843   :  { %v719_v57 = vmul.f32 %v2456_v29, %v714_v56  ;;  %v573_v58 = vpack.c.bf16 %v572_v55, %v572_v55 }
 0x844   :  { %v716_v59 = vpop.permute.xlu0 %715 }
 0x845   :  { %v721_v60 = vpack.c.bf16 %v719_v57, %v719_v57  ;;  %v720_v61 = vmul.f32 %v2458_v37, %v716_v59  ;;  %615 = vrot.lane.b32.xlu1 %v573_v58, %s2751_s1  ;;  %v911_v58 = vrot.slane %v3019_v53, 7 }
 0x847   :  { %v725_v62 = vunpack.c.l.b16 %v721_v60  ;;  %v722_v63 = vpack.c.bf16 %v720_v61, %v720_v61 }
 0x849   :  { %v726_v1 = vunpack.c.l.b16 %v722_v63  ;;  %v727_v2 = vrot.slane %v725_v62, 2 }
 0x84b   :  { %v728_v3 = vrot.slane %v726_v1, 1 }
 0x84d   :  { %v729_v4 = vsel %vm239_vm2, %v728_v3, %v727_v2 }
 0x84e   :  { %v730_v5 = vpack.c.b16 %v729_v4, %v729_v4 }
 0x850   :  { %731 = vrot.lane.b32.xlu0 %v730_v5, %s2751_s1 }
 0x8b7   :  { %v616_v6 = vpop.permute.xlu1 %615 }
 0x8b8   :  { %2205 = vmatmul.mubr.msk.bf16.vlgmr.msra.gmra.mrb[12].mxu0 %vm256_vm3, %v616_v6 }
 0x8b9   :  { %2209 = vmatpush3.bf16.msra.mxu0 %v2906_v33  ;;  %2212 = vmatprep.mubr.msk.bf16.mxu0 %vm2750_vm0, %v2749_v0 }
 0x8ba   :  { %2210 = vmatprep.subr.bf16.mxu0 %v2749_v0 }
 0x8bd   :  { %2211 = vmatpush3.bf16.msra.mxu0 %v2915_v35 }
 0x8be   :  { %2240 = vmatprep.subr.bf16.mxu0 %v2749_v0 }
 0x8c2   :  { %v732_v7 = vpop.permute.xlu0 %731 }
 0x8c3   :  { %2221 = vmatmul.mubr.msk.bf16.vlgmr.msra.gmra.mrb[8].mxu1 %vm256_vm3, %v732_v7 }
 0x8c4   :  { %2213 = vmatmul.mubr.msk.bf16.vlgmr.msra.gmra.mrb[12].mxu0 %vm256_vm3, %v732_v7  ;;  %2225 = vmatpush3.bf16.msra.mxu1 %v2967_v41 }
 0x8c5   :  { %2226 = vmatprep.subr.bf16.mxu1 %v2749_v0  ;;  %2228 = vmatprep.mubr.msk.bf16.mxu1 %vm2750_vm0, %v2749_v0 }
 0x8c6   :  { %2241 = vmatpush3.bf16.msra.mxu0 %v2911_v34  ;;  %2244 = vmatprep.mubr.msk.bf16.mxu0 %vm2750_vm0, %v2749_v0 }
 0x8c7   :  { %2242 = vmatprep.subr.bf16.mxu0 %v2749_v0 }
 0x8c8   :  { %2227 = vmatpush3.bf16.msra.mxu1 %v2972_v42 }
 0x8c9   :  { %2232 = vmatprep.subr.bf16.mxu1 %v2749_v0 }
 0x8ca   :  { %2243 = vmatpush3.bf16.msra.mxu0 %v2920_v36 }
 0x8cb   :  { %2248 = vmatprep.subr.bf16.mxu0 %v2749_v0 }
 0x996   :  { %v835_v8 = vpop.f32.mrb[8].mxu1 }
 0x997   :  { %v888_v10 = vrot.slane %v835_v8, 5  ;;  %v889_v12 = vrot.slane %v835_v8, 6  ;;  %v770_v13 = vpop.f32.mrb[12].mxu0  ;;  %v2222_v14 = vpop.f32.mrb[9].mxu1 }
 0x998   :  { %v2345_v15 = vadd.f32 %v2944_v50, %v770_v13  ;;  %v2214_v16 = vpop.f32.mrb[13].mxu0  ;;  %v838_v17 = vpop.f32.mrb[10].mxu1 }
 0x999   :  { %v892_v18 = vadd.f32 %v888_v10, %v2889_v11  ;;  %v773_v19 = vpop.f32.mrb[14].mxu0  ;;  %v2223_v20 = vpop.f32.mrb[11].mxu1  ;;  %v893_v21 = vadd.f32 %v889_v12, %v2887_v9 }
 0x99a   :  { %2465 = vtanh.f32 %v2345_v15  ;;  %v2215_v22 = vpop.f32.mrb[15].mxu0  ;;  %v2048_v27 = vmul.f32 -1.442695, %v2345_v15 }
 0x99b   :  { %2467 = vtanh.f32 %v892_v18  ;;  %v2051_v29 = vmul.f32 -1.442695, %v892_v18  ;;  %v2052_v30 = vmul.f32 -1.442695, %v893_v21 }
 0x99c   :  { %2469 = vtanh.f32 %v893_v21 }
 0x99d   :  { %2471 = vpow2.f32 %v2048_v27 }
 0x99e   :  { %2473 = vpow2.f32 %v2051_v29 }
 0x99f   :  { %2475 = vpow2.f32 %v2052_v30 }
 0x9a4   :  { %v2466_v23 = vpop.eup %2465 }
 0x9a5   :  { %v2468_v24 = vpop.eup %2467  ;;  %785 = vrot.lane.b32.xlu1 %v2466_v23, %s2741_s19 }
 0x9a6   :  { %918 = vrot.lane.b32.xlu0 %v2468_v24, %s2741_s19  ;;  %v2470_v25 = vpop.eup %2469 }
 0x9a7   :  { %v2472_v32 = vpop.eup %2471 }
 0x9a8   :  { %v2474_v37 = vpop.eup %2473  ;;  %v779_v40 = vadd.f32 1.0, %v2472_v32 }
 0x9a9   :  { %920 = vrot.lane.b32.xlu1 %v2470_v25, %s2741_s19  ;;  %v2476_v28 = vpop.eup %2475  ;;  %v900_v31 = vadd.f32 1.0, %v2474_v37 }
 0x9aa   :  { %v901_v43 = vadd.f32 1.0, %v2476_v28  ;;  %2477 = vrcp.f32 %v779_v40 }
 0x9ab   :  { %2479 = vrcp.f32 %v900_v31 }
 0x9ac   :  { %2481 = vrcp.f32 %v901_v43 }
 0x9b4   :  { %v2478_v44 = vpop.eup %2477 }
 0x9b5   :  { %v2480_v46 = vpop.eup %2479  ;;  %v783_v55 = vmul.f32 %v2478_v44, %v3013_v47 }
 0x9b6   :  { %v2482_v26 = vpop.eup %2481  ;;  %v914_v57 = vmul.f32 %v2480_v46, %v910_v54 }
 0x9b7   :  { %v915_v62 = vmul.f32 %v2482_v26, %v911_v58 }
 0xa17   :  { %v786_v45 = vpop.permute.xlu1 %785 }
 0xa18   :  { %v788_v48 = vmul.f32 %v2478_v44, %v786_v45  ;;  %v919_v51 = vpop.permute.xlu0 %918 }
 0xa19   :  { %v924_v52 = vmul.f32 %v2480_v46, %v919_v51 }
 0xa1a   :  { %790 = vrot.lane.b32.xlu0 %v788_v48, %s2751_s1 }
 0xa1b   :  { %928 = vrot.lane.b32.xlu1 %v924_v52, %s2751_s1  ;;  %v921_v38 = vpop.permute.xlu1 %920 }
 0xa1c   :  { %v925_v39 = vmul.f32 %v2482_v26, %v921_v38 }
 0xa1e   :  { %930 = vrot.lane.b32.xlu0 %v925_v39, %s2751_s1 }
 0xa8c   :  { %v791_v56 = vpop.permute.xlu0 %790 }
 0xa8d   :  { %v3061_v59 = vadd.f32 %v791_v56, %v783_v55  ;;  %v929_v60 = vpop.permute.xlu1 %928 }
 0xa8e   :  { %v3063_v61 = vadd.f32 %v929_v60, %v914_v57 }
 0xa8f   :  { %2483 = vtanh.f32 %v3061_v59 }
 0xa90   :  { %2485 = vtanh.f32 %v3063_v61  ;;  %v931_v63 = vpop.permute.xlu0 %930 }
 0xa91   :  { %v3067_v1 = vadd.f32 %v931_v63, %v915_v62 }
 0xa93   :  { %2487 = vtanh.f32 %v3067_v1 }
 0xa99   :  { %v2484_v47 = vpop.eup %2483 }
 0xa9a   :  { %v2486_v49 = vpop.eup %2485  ;;  %796 = vrot.lane.b32.xlu1 %v2484_v47, %s2741_s19 }
 0xa9b   :  { %940 = vrot.lane.b32.xlu0 %v2486_v49, %s2741_s19 }
 0xa9d   :  { %v2488_v53 = vpop.eup %2487 }
 0xa9e   :  { %942 = vrot.lane.b32.xlu1 %v2488_v53, %s2741_s19 }
 0xb0c   :  { %v797_v2 = vpop.permute.xlu1 %796 }
 0xb0d   :  { %v799_v3 = vmul.f32 %v2478_v44, %v797_v2  ;;  %v941_v4 = vpop.permute.xlu0 %940  ;;  %v1137_v2 = vrot.slane %v3063_v61, 7 }
 0xb0e   :  { %v946_v5 = vmul.f32 %v2480_v46, %v941_v4 }
 0xb0f   :  { %v800_v6 = vpack.c.bf16 %v799_v3, %v799_v3 }
 0xb10   :  { %v948_v7 = vpack.c.bf16 %v946_v5, %v946_v5  ;;  %v943_v8 = vpop.permute.xlu1 %942 }
 0xb11   :  { %v947_v10 = vmul.f32 %v2482_v26, %v943_v8  ;;  %842 = vrot.lane.b32.xlu0 %v800_v6, %s2751_s1  ;;  %v1138_v6 = vrot.slane %v3067_v1, 7 }
 0xb12   :  { %v952_v12 = vunpack.c.l.b16 %v948_v7 }
 0xb13   :  { %v949_v13 = vpack.c.bf16 %v947_v10, %v947_v10 }
 0xb14   :  { %v954_v15 = vrot.slane %v952_v12, 3 }
 0xb15   :  { %v953_v14 = vunpack.c.l.b16 %v949_v13 }
 0xb17   :  { %v955_v16 = vrot.slane %v953_v14, 2 }
 0xb19   :  { %v956_v17 = vsel %vm239_vm2, %v955_v16, %v954_v15 }
 0xb1a   :  { %v957_v18 = vpack.c.b16 %v956_v17, %v956_v17 }
 0xb1c   :  { %958 = vrot.lane.b32.xlu1 %v957_v18, %s2751_s1 }
 0xb83   :  { %v843_v19 = vpop.permute.xlu0 %842 }
 0xb84   :  { %2229 = vmatmul.mubr.msk.bf16.vlgmr.msra.gmra.mrb[12].mxu1 %vm256_vm3, %v843_v19 }
 0xb85   :  { %2233 = vmatpush3.bf16.msra.mxu1 %v2906_v33  ;;  %2236 = vmatprep.mubr.msk.bf16.mxu1 %vm2750_vm0, %v2749_v0 }
 0xb86   :  { %2234 = vmatprep.subr.bf16.mxu1 %v2749_v0 }
 0xb89   :  { %2235 = vmatpush3.bf16.msra.mxu1 %v2915_v35 }
 0xb8a   :  { %2264 = vmatprep.subr.bf16.mxu1 %v2749_v0 }
 0xb8e   :  { %v959_v20 = vpop.permute.xlu1 %958 }
 0xb8f   :  { %2245 = vmatmul.mubr.msk.bf16.vlgmr.msra.gmra.mrb[16].mxu0 %vm256_vm3, %v959_v20 }
 0xb90   :  { %2237 = vmatmul.mubr.msk.bf16.vlgmr.msra.gmra.mrb[12].mxu1 %vm256_vm3, %v959_v20  ;;  %2249 = vmatpush3.bf16.msra.mxu0 %v2967_v41 }
 0xb91   :  { %2250 = vmatprep.subr.bf16.mxu0 %v2749_v0  ;;  %2252 = vmatprep.mubr.msk.bf16.mxu0 %vm2750_vm0, %v2749_v0 }
 0xb92   :  { %2265 = vmatpush3.bf16.msra.mxu1 %v2911_v34  ;;  %2268 = vmatprep.mubr.msk.bf16.mxu1 %vm2750_vm0, %v2749_v0 }
 0xb93   :  { %2266 = vmatprep.subr.bf16.mxu1 %v2749_v0 }
 0xb94   :  { %2251 = vmatpush3.bf16.msra.mxu0 %v2972_v42 }
 0xb95   :  { %2256 = vmatprep.subr.bf16.mxu0 %v2749_v0 }
 0xb96   :  { %2267 = vmatpush3.bf16.msra.mxu1 %v2920_v36 }
 0xb97   :  { %2272 = vmatprep.subr.bf16.mxu1 %v2749_v0 }
 0xc62   :  { %v1062_v21 = vpop.f32.mrb[16].mxu0 }
 0xc63   :  { %v1115_v22 = vrot.slane %v1062_v21, 4  ;;  %v1116_v23 = vrot.slane %v1062_v21, 5  ;;  %v997_v24 = vpop.f32.mrb[12].mxu1  ;;  %v2246_v25 = vpop.f32.mrb[17].mxu0 }
 0xc64   :  { %v2346_v27 = vadd.f32 %v2944_v50, %v997_v24  ;;  %v2238_v29 = vpop.f32.mrb[13].mxu1  ;;  %v1065_v30 = vpop.f32.mrb[18].mxu0 }
 0xc65   :  { %v1119_v32 = vadd.f32 %v1115_v22, %v2889_v11  ;;  %v1000_v37 = vpop.f32.mrb[14].mxu1  ;;  %v2247_v40 = vpop.f32.mrb[19].mxu0  ;;  %v1120_v28 = vadd.f32 %v1116_v23, %v2887_v9 }
 0xc66   :  { %2489 = vtanh.f32 %v2346_v27  ;;  %v2239_v31 = vpop.f32.mrb[15].mxu1  ;;  %v2054_v46 = vmul.f32 -1.442695, %v2346_v27 }
 0xc67   :  { %2491 = vtanh.f32 %v1119_v32  ;;  %v2057_v48 = vmul.f32 -1.442695, %v1119_v32  ;;  %v2058_v51 = vmul.f32 -1.442695, %v1120_v28 }
 0xc68   :  { %2493 = vtanh.f32 %v1120_v28 }
 0xc69   :  { %2495 = vpow2.f32 %v2054_v46 }
 0xc6a   :  { %2497 = vpow2.f32 %v2057_v48 }
 0xc6b   :  { %2499 = vpow2.f32 %v2058_v51 }
 0xc70   :  { %v2490_v43 = vpop.eup %2489 }
 0xc71   :  { %v2492_v44 = vpop.eup %2491  ;;  %1012 = vrot.lane.b32.xlu0 %v2490_v43, %s2741_s19 }
 0xc72   :  { %1145 = vrot.lane.b32.xlu1 %v2492_v44, %s2741_s19  ;;  %v2494_v45 = vpop.eup %2493 }
 0xc73   :  { %v2496_v52 = vpop.eup %2495 }
 0xc74   :  { %v2498_v26 = vpop.eup %2497  ;;  %v1006_v38 = vadd.f32 1.0, %v2496_v52 }
 0xc75   :  { %1147 = vrot.lane.b32.xlu0 %v2494_v45, %s2741_s19  ;;  %v2500_v39 = vpop.eup %2499  ;;  %v1127_v54 = vadd.f32 1.0, %v2498_v26 }
 0xc76   :  { %v1128_v55 = vadd.f32 1.0, %v2500_v39  ;;  %2501 = vrcp.f32 %v1006_v38 }
 0xc77   :  { %2503 = vrcp.f32 %v1127_v54 }
 0xc78   :  { %2505 = vrcp.f32 %v1128_v55 }
 0xc80   :  { %v2502_v56 = vpop.eup %2501 }
 0xc81   :  { %v2504_v58 = vpop.eup %2503  ;;  %v1010_v3 = vmul.f32 %v2502_v56, %v3061_v59 }
 0xc82   :  { %v2506_v47 = vpop.eup %2505  ;;  %v1141_v5 = vmul.f32 %v2504_v58, %v1137_v2 }
 0xc83   :  { %v1142_v12 = vmul.f32 %v2506_v47, %v1138_v6 }
 0xce3   :  { %v1013_v57 = vpop.permute.xlu0 %1012 }
 0xce4   :  { %v1015_v60 = vmul.f32 %v2502_v56, %v1013_v57  ;;  %v1146_v62 = vpop.permute.xlu1 %1145 }
 0xce5   :  { %v1151_v63 = vmul.f32 %v2504_v58, %v1146_v62 }
 0xce6   :  { %1017 = vrot.lane.b32.xlu1 %v1015_v60, %s2751_s1 }
 0xce7   :  { %v1148_v49 = vpop.permute.xlu0 %1147  ;;  %1155 = vrot.lane.b32.xlu0 %v1151_v63, %s2751_s1 }
 0xce8   :  { %v1152_v53 = vmul.f32 %v2506_v47, %v1148_v49 }
 0xcea   :  { %1157 = vrot.lane.b32.xlu1 %v1152_v53, %s2751_s1 }
 0xd58   :  { %v1018_v4 = vpop.permute.xlu1 %1017 }
 0xd59   :  { %v3109_v7 = vadd.f32 %v1018_v4, %v1010_v3  ;;  %v1156_v8 = vpop.permute.xlu0 %1155 }
 0xd5a   :  { %v3111_v10 = vadd.f32 %v1156_v8, %v1141_v5 }
 0xd5b   :  { %2507 = vtanh.f32 %v3109_v7 }
 0xd5c   :  { %2509 = vtanh.f32 %v3111_v10  ;;  %v1158_v13 = vpop.permute.xlu1 %1157 }
 0xd5d   :  { %v3115_v14 = vadd.f32 %v1158_v13, %v1142_v12  ;;  %v1364_v12 = vrot.slane %v3111_v10, 7 }
 0xd5f   :  { %2511 = vtanh.f32 %v3115_v14 }
 0xd65   :  { %v2508_v59 = vpop.eup %2507 }
 0xd66   :  { %v2510_v61 = vpop.eup %2509  ;;  %1023 = vrot.lane.b32.xlu0 %v2508_v59, %s2741_s19 }
 0xd67   :  { %1167 = vrot.lane.b32.xlu1 %v2510_v61, %s2741_s19 }
 0xd69   :  { %v2512_v1 = vpop.eup %2511 }
 0xd6a   :  { %1169 = vrot.lane.b32.xlu0 %v2512_v1, %s2741_s19  ;;  %v1365_v1 = vrot.slane %v3115_v14, 7 }
 0xdd8   :  { %v1024_v15 = vpop.permute.xlu0 %1023 }
 0xdd9   :  { %v1026_v16 = vmul.f32 %v2502_v56, %v1024_v15  ;;  %v1168_v17 = vpop.permute.xlu1 %1167 }
 0xdda   :  { %v1173_v18 = vmul.f32 %v2504_v58, %v1168_v17 }
 0xddb   :  { %v1027_v19 = vpack.c.bf16 %v1026_v16, %v1026_v16 }
 0xddc   :  { %v1175_v20 = vpack.c.bf16 %v1173_v18, %v1173_v18  ;;  %v1170_v21 = vpop.permute.xlu0 %1169 }
 0xddd   :  { %v1174_v22 = vmul.f32 %v2506_v47, %v1170_v21  ;;  %1069 = vrot.lane.b32.xlu1 %v1027_v19, %s2751_s1 }
 0xdde   :  { %v1179_v23 = vunpack.c.l.b16 %v1175_v20 }
 0xddf   :  { %v1176_v24 = vpack.c.bf16 %v1174_v22, %v1174_v22 }
 0xde0   :  { %v1181_v27 = vrot.slane %v1179_v23, 4 }
 0xde1   :  { %v1180_v25 = vunpack.c.l.b16 %v1176_v24 }
 0xde3   :  { %v1182_v29 = vrot.slane %v1180_v25, 3 }
 0xde5   :  { %v1183_v30 = vsel %vm239_vm2, %v1182_v29, %v1181_v27 }
 0xde6   :  { %v1184_v32 = vpack.c.b16 %v1183_v30, %v1183_v30 }
 0xde8   :  { %1185 = vrot.lane.b32.xlu0 %v1184_v32, %s2751_s1 }
 0xe4f   :  { %v1070_v37 = vpop.permute.xlu1 %1069 }
 0xe50   :  { %2253 = vmatmul.mubr.msk.bf16.vlgmr.msra.gmra.mrb[20].mxu0 %vm256_vm3, %v1070_v37 }
 0xe51   :  { %2257 = vmatpush3.bf16.msra.mxu0 %v2906_v33  ;;  %2260 = vmatprep.mubr.msk.bf16.mxu0 %vm2750_vm0, %v2749_v0 }
 0xe52   :  { %2258 = vmatprep.subr.bf16.mxu0 %v2749_v0 }
 0xe55   :  { %2259 = vmatpush3.bf16.msra.mxu0 %v2915_v35 }
 0xe56   :  { %2288 = vmatprep.subr.bf16.mxu0 %v2749_v0 }
 0xe5a   :  { %v1186_v40 = vpop.permute.xlu0 %1185 }
 0xe5b   :  { %2269 = vmatmul.mubr.msk.bf16.vlgmr.msra.gmra.mrb[16].mxu1 %vm256_vm3, %v1186_v40 }
 0xe5c   :  { %2261 = vmatmul.mubr.msk.bf16.vlgmr.msra.gmra.mrb[20].mxu0 %vm256_vm3, %v1186_v40  ;;  %2273 = vmatpush3.bf16.msra.mxu1 %v2967_v41 }
 0xe5d   :  { %2274 = vmatprep.subr.bf16.mxu1 %v2749_v0  ;;  %2276 = vmatprep.mubr.msk.bf16.mxu1 %vm2750_vm0, %v2749_v0 }
 0xe5e   :  { %2289 = vmatpush3.bf16.msra.mxu0 %v2911_v34  ;;  %2292 = vmatprep.mubr.msk.bf16.mxu0 %vm2750_vm0, %v2749_v0 }
 0xe5f   :  { %2290 = vmatprep.subr.bf16.mxu0 %v2749_v0 }
 0xe60   :  { %2275 = vmatpush3.bf16.msra.mxu1 %v2972_v42 }
 0xe61   :  { %2280 = vmatprep.subr.bf16.mxu1 %v2749_v0 }
 0xe62   :  { %2291 = vmatpush3.bf16.msra.mxu0 %v2920_v36 }
 0xe63   :  { %2296 = vmatprep.subr.bf16.mxu0 %v2749_v0 }
 0xf2e   :  { %v1289_v33 = vpop.f32.mrb[16].mxu1 }
 0xf2f   :  { %v1342_v35 = vrot.slane %v1289_v33, 3  ;;  %v1343_v28 = vrot.slane %v1289_v33, 4  ;;  %v1224_v31 = vpop.f32.mrb[20].mxu0  ;;  %v2270_v43 = vpop.f32.mrb[17].mxu1 }
 0xf30   :  { %v2347_v34 = vadd.f32 %v2944_v50, %v1224_v31  ;;  %v2262_v44 = vpop.f32.mrb[21].mxu0  ;;  %v1292_v45 = vpop.f32.mrb[18].mxu1 }
 0xf31   :  { %v1346_v46 = vadd.f32 %v1342_v35, %v2889_v11  ;;  %v1227_v48 = vpop.f32.mrb[22].mxu0  ;;  %v2271_v51 = vpop.f32.mrb[19].mxu1  ;;  %v1347_v52 = vadd.f32 %v1343_v28, %v2887_v9  ;;  %v3179_v44 = vld [vmem:[#allocation5 + $0x8] sm:$0xff]  }
 0xf32   :  { %2513 = vtanh.f32 %v2347_v34  ;;  %v2263_v26 = vpop.f32.mrb[23].mxu0  ;;  %v2060_v50 = vmul.f32 -1.442695, %v2347_v34  ;;  %v3173_v34 = vld [vmem:[#allocation5] sm:$0xff]  }
 0xf33   :  { %2515 = vtanh.f32 %v1346_v46  ;;  %v2063_v54 = vmul.f32 -1.442695, %v1346_v46  ;;  %v2064_v55 = vmul.f32 -1.442695, %v1347_v52  ;;  %v2595_v46 = vld [vmem:[%s3294_s2] sm:$0xff]  }
 0xf34   :  { %2517 = vtanh.f32 %v1347_v52 }
 0xf35   :  { %2519 = vpow2.f32 %v2060_v50 }
 0xf36   :  { %2521 = vpow2.f32 %v2063_v54 }
 0xf37   :  { %2523 = vpow2.f32 %v2064_v55 }
 0xf3c   :  { %v2514_v36 = vpop.eup %2513 }
 0xf3d   :  { %v2516_v38 = vpop.eup %2515  ;;  %1239 = vrot.lane.b32.xlu1 %v2514_v36, %s2741_s19 }
 0xf3e   :  { %1372 = vrot.lane.b32.xlu0 %v2516_v38, %s2741_s19  ;;  %v2518_v39 = vpop.eup %2517  ;;  %v3204_v38 = vld [vmem:[%s3298_s6] ss:$0 sm:$0xff] }
 0xf3f   :  { %v2520_v56 = vpop.eup %2519 }
 0xf40   :  { %v2522_v57 = vpop.eup %2521  ;;  %v1233_v58 = vadd.f32 1.0, %v2520_v56 }
 0xf41   :  { %1374 = vrot.lane.b32.xlu1 %v2518_v39, %s2741_s19  ;;  %v2524_v60 = vpop.eup %2523  ;;  %v1354_v62 = vadd.f32 1.0, %v2522_v57 }
 0xf42   :  { %v1355_v63 = vadd.f32 1.0, %v2524_v60  ;;  %2525 = vrcp.f32 %v1233_v58 }
 0xf43   :  { %2527 = vrcp.f32 %v1354_v62 }
 0xf44   :  { %2529 = vrcp.f32 %v1355_v63 }
 0xf4c   :  { %v2526_v47 = vpop.eup %2525 }
 0xf4d   :  { %v2528_v53 = vpop.eup %2527  ;;  %v1237_v13 = vmul.f32 %v2526_v47, %v3109_v7 }
 0xf4e   :  { %v2530_v5 = vpop.eup %2529  ;;  %v1368_v61 = vmul.f32 %v2528_v53, %v1364_v12 }
 0xf4f   :  { %v1369_v18 = vmul.f32 %v2530_v5, %v1365_v1 }
 0xfaf   :  { %v1240_v49 = vpop.permute.xlu1 %1239 }
 0xfb0   :  { %v1242_v2 = vmul.f32 %v2526_v47, %v1240_v49  ;;  %v1373_v3 = vpop.permute.xlu0 %1372 }
 0xfb1   :  { %v1378_v4 = vmul.f32 %v2528_v53, %v1373_v3 }
 0xfb2   :  { %1244 = vrot.lane.b32.xlu0 %v1242_v2, %s2751_s1 }
 0xfb3   :  { %1382 = vrot.lane.b32.xlu1 %v1378_v4, %s2751_s1  ;;  %v1375_v6 = vpop.permute.xlu1 %1374 }
 0xfb4   :  { %v1379_v8 = vmul.f32 %v2530_v5, %v1375_v6 }
 0xfb6   :  { %1384 = vrot.lane.b32.xlu0 %v1379_v8, %s2751_s1 }
0x1024   :  { %v1245_v59 = vpop.permute.xlu0 %1244 }
0x1025   :  { %v3157_v15 = vadd.f32 %v1245_v59, %v1237_v13  ;;  %v1383_v16 = vpop.permute.xlu1 %1382 }
0x1026   :  { %v3159_v17 = vadd.f32 %v1383_v16, %v1368_v61 }
0x1027   :  { %2531 = vtanh.f32 %v3157_v15 }
0x1028   :  { %2533 = vtanh.f32 %v3159_v17  ;;  %v1385_v19 = vpop.permute.xlu0 %1384 }
0x1029   :  { %v3163_v20 = vadd.f32 %v1385_v19, %v1369_v18 }
0x102b   :  { %2535 = vtanh.f32 %v3163_v20 }
0x1031   :  { %v2532_v7 = vpop.eup %2531 }
0x1032   :  { %v2534_v10 = vpop.eup %2533  ;;  %1250 = vrot.lane.b32.xlu1 %v2532_v7, %s2741_s19 }
0x1033   :  { %1394 = vrot.lane.b32.xlu0 %v2534_v10, %s2741_s19  ;;  %v1591_v10 = vrot.slane %v3159_v17, 7 }
0x1035   :  { %v2536_v14 = vpop.eup %2535 }
0x1036   :  { %1396 = vrot.lane.b32.xlu1 %v2536_v14, %s2741_s19 }
0x10a4   :  { %v1251_v21 = vpop.permute.xlu1 %1250 }
0x10a5   :  { %v1253_v22 = vmul.f32 %v2526_v47, %v1251_v21  ;;  %v1395_v23 = vpop.permute.xlu0 %1394 }
0x10a6   :  { %v1400_v24 = vmul.f32 %v2528_v53, %v1395_v23  ;;  %v1592_v23 = vrot.slane %v3163_v20, 7 }
0x10a7   :  { %v1254_v25 = vpack.c.bf16 %v1253_v22, %v1253_v22 }
0x10a8   :  { %v1402_v27 = vpack.c.bf16 %v1400_v24, %v1400_v24  ;;  %v1397_v29 = vpop.permute.xlu1 %1396 }
0x10a9   :  { %v1401_v30 = vmul.f32 %v2530_v5, %v1397_v29  ;;  %1296 = vrot.lane.b32.xlu0 %v1254_v25, %s2751_s1 }
0x10aa   :  { %v1406_v32 = vunpack.c.l.b16 %v1402_v27 }
0x10ab   :  { %v1403_v37 = vpack.c.bf16 %v1401_v30, %v1401_v30 }
0x10ac   :  { %v1408_v33 = vrot.slane %v1406_v32, 5 }
0x10ad   :  { %v1407_v40 = vunpack.c.l.b16 %v1403_v37 }
0x10af   :  { %v1409_v35 = vrot.slane %v1407_v40, 4 }
0x10b1   :  { %v1410_v28 = vsel %vm239_vm2, %v1409_v35, %v1408_v33 }
0x10b2   :  { %v1411_v31 = vpack.c.b16 %v1410_v28, %v1410_v28 }
0x10b4   :  { %1412 = vrot.lane.b32.xlu1 %v1411_v31, %s2751_s1 }
0x111b   :  { %v1297_v43 = vpop.permute.xlu0 %1296 }
0x111c   :  { %2277 = vmatmul.mubr.msk.bf16.vlgmr.msra.gmra.mrb[20].mxu1 %vm256_vm3, %v1297_v43 }
0x111d   :  { %2281 = vmatpush3.bf16.msra.mxu1 %v3173_v34  ;;  %2284 = vmatprep.mubr.msk.bf16.mxu1 %vm2750_vm0, %v2749_v0 }
0x111e   :  { %2282 = vmatprep.subr.bf16.mxu1 %v2749_v0 }
0x1121   :  { %2283 = vmatpush3.bf16.msra.mxu1 %v3179_v44 }
0x1122   :  { %2312 = vmatprep.subr.bf16.mxu1 %v2749_v0 }
0x1126   :  { %v1413_v45 = vpop.permute.xlu1 %1412 }
0x1127   :  { %2293 = vmatmul.mubr.msk.bf16.vlgmr.msra.gmra.mrb[24].mxu0 %vm256_vm3, %v1413_v45 }
0x1128   :  { %2285 = vmatmul.mubr.msk.bf16.vlgmr.msra.gmra.mrb[20].mxu1 %vm256_vm3, %v1413_v45  ;;  %2297 = vmatpush3.bf16.msra.mxu0 %v2967_v41  ;;  %v2596_v41 = vld [vmem:[%s3294_s2 + $0x8] sm:$0xff]   ;;  %s2752_s2 = smov [#allocation11]  }
0x1129   :  { %2298 = vmatprep.subr.bf16.mxu0 %v2749_v0  ;;  %2300 = vmatprep.mubr.msk.bf16.mxu0 %vm2750_vm0, %v2749_v0  ;;  %s2012_s6 = sshll.u32 %s2752_s2, 4  ;;  %s2013_s6 = int_to_ptr.vmem [resolvable:$true] %s2012_s6 }
0x112a   :  { %2313 = vmatpush3.bf16.msra.mxu1 %v2595_v46  ;;  %2316 = vmatprep.mubr.msk.bf16.mxu1 %vm2750_vm0, %v2749_v0  ;;  %s2710_s22 = scalar_lea.vmem %s2013_s6, 32  ;;  %p2715_p13 = scmp.lt.s32.totalorder %s2013_s6, %s2013_s6 }
0x112b   :  { %2314 = vmatprep.subr.bf16.mxu1 %v2749_v0  ;;  %p2711_p12 = scmp.ne.s32.totalorder %s2013_s6, %s2710_s22  ;;  %p2716_p0 = scmp.lt.s32.totalorder %s2710_s22, %s2710_s22 }
0x112c   :  { %2299 = vmatpush3.bf16.msra.mxu0 %v2972_v42 }
0x112d   :  { %2304 = vmatprep.subr.bf16.mxu0 %v2749_v0  ;;  %p2717_p1 = por %p2716_p0, %p2715_p13 }
0x112e   :  { %2315 = vmatpush3.bf16.msra.mxu1 %v2596_v41 }
0x112f   :  { %2320 = vmatprep.subr.bf16.mxu1 %v2749_v0  ;;  %p2718_p2 = pnand %p2717_p1, %p2711_p12 }
0x11fa   :  { %v1516_v48 = vpop.f32.mrb[24].mxu0 }
0x11fb   :  { %v1569_v51 = vrot.slane %v1516_v48, 2  ;;  %v1570_v52 = vrot.slane %v1516_v48, 3  ;;  %v1451_v26 = vpop.f32.mrb[20].mxu1  ;;  %v2294_v36 = vpop.f32.mrb[25].mxu0 }
0x11fc   :  { %v2348_v42 = vadd.f32 %v3204_v38, %v1451_v26  ;;  %v2286_v39 = vpop.f32.mrb[21].mxu1  ;;  %v1519_v50 = vpop.f32.mrb[26].mxu0 }
0x11fd   :  { %v1573_v54 = vadd.f32 %v1569_v51, %v2889_v11  ;;  %v1454_v55 = vpop.f32.mrb[22].mxu1  ;;  %v2295_v56 = vpop.f32.mrb[27].mxu0  ;;  %v1574_v57 = vadd.f32 %v1570_v52, %v2887_v9  ;;  %v2598_v50 = vld [vmem:[#allocation7] sm:$0xff]  }
0x11fe   :  { %2537 = vtanh.f32 %v2348_v42  ;;  %v2287_v58 = vpop.f32.mrb[23].mxu1  ;;  %v2066_v47 = vmul.f32 -1.442695, %v2348_v42 }
0x11ff   :  { %2539 = vtanh.f32 %v1573_v54  ;;  %v2069_v49 = vmul.f32 -1.442695, %v1573_v54  ;;  %v2070_v53 = vmul.f32 -1.442695, %v1574_v57  ;;  %v2599_v54 = vld [vmem:[#allocation7 + $0x8] sm:$0xff]  }
0x1200   :  { %2541 = vtanh.f32 %v1574_v57 }
0x1201   :  { %2543 = vpow2.f32 %v2066_v47 }
0x1202   :  { %2545 = vpow2.f32 %v2069_v49 }
0x1203   :  { %2547 = vpow2.f32 %v2070_v53 }
0x1208   :  { %v2538_v60 = vpop.eup %2537 }
0x1209   :  { %v2540_v62 = vpop.eup %2539  ;;  %1466 = vrot.lane.b32.xlu0 %v2538_v60, %s2741_s19 }
0x120a   :  { %1599 = vrot.lane.b32.xlu1 %v2540_v62, %s2741_s19  ;;  %v2542_v63 = vpop.eup %2541 }
0x120b   :  { %v2544_v2 = vpop.eup %2543 }
0x120c   :  { %v2546_v3 = vpop.eup %2545  ;;  %v1460_v4 = vadd.f32 1.0, %v2544_v2 }
0x120d   :  { %1601 = vrot.lane.b32.xlu0 %v2542_v63, %s2741_s19  ;;  %v2548_v5 = vpop.eup %2547  ;;  %v1581_v6 = vadd.f32 1.0, %v2546_v3 }
0x120e   :  { %v1582_v8 = vadd.f32 1.0, %v2548_v5  ;;  %2549 = vrcp.f32 %v1460_v4 }
0x120f   :  { %2551 = vrcp.f32 %v1581_v6 }
0x1210   :  { %2553 = vrcp.f32 %v1582_v8 }
0x1218   :  { %v2550_v12 = vpop.eup %2549 }
0x1219   :  { %v2552_v59 = vpop.eup %2551  ;;  %v1464_v14 = vmul.f32 %v2550_v12, %v3157_v15 }
0x121a   :  { %v2554_v18 = vpop.eup %2553  ;;  %v1595_v22 = vmul.f32 %v2552_v59, %v1591_v10 }
0x121b   :  { %v1596_v29 = vmul.f32 %v2554_v18, %v1592_v23 }
0x127b   :  { %v1467_v13 = vpop.permute.xlu0 %1466 }
0x127c   :  { %v1469_v61 = vmul.f32 %v2550_v12, %v1467_v13  ;;  %v1600_v1 = vpop.permute.xlu1 %1599 }
0x127d   :  { %v1605_v16 = vmul.f32 %v2552_v59, %v1600_v1 }
0x127e   :  { %1471 = vrot.lane.b32.xlu1 %v1469_v61, %s2751_s1 }
0x127f   :  { %v1602_v19 = vpop.permute.xlu0 %1601  ;;  %1609 = vrot.lane.b32.xlu0 %v1605_v16, %s2751_s1 }
0x1280   :  { %v1606_v7 = vmul.f32 %v2554_v18, %v1602_v19 }
0x1282   :  { %1611 = vrot.lane.b32.xlu1 %v1606_v7, %s2751_s1 }
0x12f0   :  { %v1472_v21 = vpop.permute.xlu1 %1471 }
0x12f1   :  { %v3218_v24 = vadd.f32 %v1472_v21, %v1464_v14  ;;  %v1610_v25 = vpop.permute.xlu0 %1609 }
0x12f2   :  { %v3220_v27 = vadd.f32 %v1610_v25, %v1595_v22 }
0x12f3   :  { %2555 = vtanh.f32 %v3218_v24 }
0x12f4   :  { %2557 = vtanh.f32 %v3220_v27  ;;  %v1612_v30 = vpop.permute.xlu1 %1611 }
0x12f5   :  { %v3224_v32 = vadd.f32 %v1612_v30, %v1596_v29  ;;  %v1818_v30 = vrot.slane %v3220_v27, 7 }
0x12f7   :  { %2559 = vtanh.f32 %v3224_v32 }
0x12fd   :  { %v2556_v15 = vpop.eup %2555 }
0x12fe   :  { %v2558_v17 = vpop.eup %2557  ;;  %1477 = vrot.lane.b32.xlu0 %v2556_v15, %s2741_s19 }
0x12ff   :  { %1621 = vrot.lane.b32.xlu1 %v2558_v17, %s2741_s19 }
0x1301   :  { %v2560_v20 = vpop.eup %2559 }
0x1302   :  { %1623 = vrot.lane.b32.xlu0 %v2560_v20, %s2741_s19 }
0x1370   :  { %v1478_v37 = vpop.permute.xlu0 %1477 }
0x1371   :  { %v1480_v40 = vmul.f32 %v2550_v12, %v1478_v37  ;;  %v1622_v33 = vpop.permute.xlu1 %1621  ;;  %v1819_v37 = vrot.slane %v3224_v32, 7 }
0x1372   :  { %v1627_v35 = vmul.f32 %v2552_v59, %v1622_v33 }
0x1373   :  { %v1481_v28 = vpack.c.bf16 %v1480_v40, %v1480_v40 }
0x1374   :  { %v1629_v31 = vpack.c.bf16 %v1627_v35, %v1627_v35  ;;  %v1624_v43 = vpop.permute.xlu0 %1623 }
0x1375   :  { %v1628_v45 = vmul.f32 %v2554_v18, %v1624_v43  ;;  %1523 = vrot.lane.b32.xlu1 %v1481_v28, %s2751_s1 }
0x1376   :  { %v1633_v46 = vunpack.c.l.b16 %v1629_v31 }
0x1377   :  { %v1630_v41 = vpack.c.bf16 %v1628_v45, %v1628_v45 }
0x1378   :  { %v1635_v51 = vrot.slane %v1633_v46, 6 }
0x1379   :  { %v1634_v48 = vunpack.c.l.b16 %v1630_v41 }
0x137b   :  { %v1636_v52 = vrot.slane %v1634_v48, 5 }
0x137d   :  { %v1637_v26 = vsel %vm239_vm2, %v1636_v52, %v1635_v51 }
0x137e   :  { %v1638_v36 = vpack.c.b16 %v1637_v26, %v1637_v26 }
0x1380   :  { %1639 = vrot.lane.b32.xlu0 %v1638_v36, %s2751_s1 }
0x13e7   :  { %v1524_v42 = vpop.permute.xlu1 %1523 }
0x13e8   :  { %2301 = vmatmul.mubr.msk.bf16.vlgmr.msra.gmra.mrb[28].mxu0 %vm256_vm3, %v1524_v42 }
0x13e9   :  { %2305 = vmatpush3.bf16.msra.mxu0 %v3173_v34  ;;  %2308 = vmatprep.mubr.msk.bf16.mxu0 %vm2750_vm0, %v2749_v0 }
0x13ea   :  { %2306 = vmatprep.subr.bf16.mxu0 %v2749_v0 }
0x13ed   :  { %2307 = vmatpush3.bf16.msra.mxu0 %v3179_v44 }
0x13ee   :  { %2336 = vmatprep.subr.bf16.mxu0 %v2749_v0 }
0x13f2   :  { %v1640_v39 = vpop.permute.xlu0 %1639 }
0x13f3   :  { %2317 = vmatmul.mubr.msk.bf16.vlgmr.msra.gmra.mrb[24].mxu1 %vm256_vm3, %v1640_v39 }
0x13f4   :  { %2309 = vmatmul.mubr.msk.bf16.vlgmr.msra.gmra.mrb[28].mxu0 %vm256_vm3, %v1640_v39  ;;  %2321 = vmatpush3.bf16.msra.mxu1 %v2598_v50 }
0x13f5   :  { %2322 = vmatprep.subr.bf16.mxu1 %v2749_v0  ;;  %2324 = vmatprep.mubr.msk.bf16.mxu1 %vm2750_vm0, %v2749_v0 }
0x13f6   :  { %2340 = vmatprep.mubr.msk.bf16.mxu0 %vm2750_vm0, %v2749_v0 }
0x13f8   :  { %2323 = vmatpush3.bf16.msra.mxu1 %v2599_v54 }
0x13f9   :  { %2328 = vmatprep.subr.bf16.mxu1 %v2749_v0 }
0x14c6   :  { %v1743_v55 = vpop.f32.mrb[24].mxu1 }
0x14c7   :  { %v1796_v56 = vrot.slane %v1743_v55, 1  ;;  %v1797_v57 = vrot.slane %v1743_v55, 2  ;;  %v1678_v58 = vpop.f32.mrb[28].mxu0  ;;  %v2318_v60 = vpop.f32.mrb[25].mxu1 }
0x14c8   :  { %v2349_v62 = vadd.f32 %v3204_v38, %v1678_v58  ;;  %v2310_v63 = vpop.f32.mrb[29].mxu0  ;;  %v1746_v47 = vpop.f32.mrb[26].mxu1 }
0x14c9   :  { %v1800_v49 = vadd.f32 %v1796_v56, %v2889_v11  ;;  %v1681_v53 = vpop.f32.mrb[30].mxu0  ;;  %v2319_v2 = vpop.f32.mrb[27].mxu1  ;;  %v1801_v3 = vadd.f32 %v1797_v57, %v2887_v9 }
0x14ca   :  { %2561 = vtanh.f32 %v2349_v62  ;;  %v2311_v4 = vpop.f32.mrb[31].mxu0  ;;  %v2072_v12 = vmul.f32 -1.442695, %v2349_v62 }
0x14cb   :  { %2563 = vtanh.f32 %v1800_v49  ;;  %v2075_v13 = vmul.f32 -1.442695, %v1800_v49  ;;  %v2076_v11 = vmul.f32 -1.442695, %v1801_v3 }
0x14cc   :  { %2565 = vtanh.f32 %v1801_v3 }
0x14cd   :  { %2567 = vpow2.f32 %v2072_v12 }
0x14ce   :  { %2569 = vpow2.f32 %v2075_v13  ;;  %v2399_v13 = vld [vmem:[#allocation8] sm:$0xff]  }
0x14cf   :  { %2571 = vpow2.f32 %v2076_v11  ;;  %2337 = vmatpush3.bf16.msra.mxu0 %v2399_v13  ;;  %v2400_v11 = vld [vmem:[#allocation8 + $0x8] sm:$0xff]  }
0x14d0   :  { %2338 = vmatprep.subr.bf16.mxu0 %v2749_v0 }
0x14d3   :  { %2339 = vmatpush3.bf16.msra.mxu0 %v2400_v11 }
0x14d4   :  { %v2562_v5 = vpop.eup %2561 }
0x14d5   :  { %v2564_v6 = vpop.eup %2563  ;;  %1693 = vrot.lane.b32.xlu1 %v2562_v5, %s2741_s19 }
0x14d6   :  { %1826 = vrot.lane.b32.xlu0 %v2564_v6, %s2741_s19  ;;  %v2566_v8 = vpop.eup %2565 }
0x14d7   :  { %v2568_v9 = vpop.eup %2567 }
0x14d8   :  { %v2570_v59 = vpop.eup %2569  ;;  %v1687_v61 = vadd.f32 1.0, %v2568_v9 }
0x14d9   :  { %1828 = vrot.lane.b32.xlu1 %v2566_v8, %s2741_s19  ;;  %v2572_v1 = vpop.eup %2571  ;;  %v1808_v16 = vadd.f32 1.0, %v2570_v59 }
0x14da   :  { %v1809_v18 = vadd.f32 1.0, %v2572_v1  ;;  %2573 = vrcp.f32 %v1687_v61 }
0x14db   :  { %2575 = vrcp.f32 %v1808_v16 }
0x14dc   :  { %2577 = vrcp.f32 %v1809_v18  ;;  %v2079_v18 = vld [vmem:[#allocation10] ss:$0 sm:$0xff] }
0x14e4   :  { %v2574_v19 = vpop.eup %2573 }
0x14e5   :  { %v2576_v10 = vpop.eup %2575  ;;  %v1691_v15 = vmul.f32 %v2574_v19, %v3218_v24 }
0x14e6   :  { %v2578_v23 = vpop.eup %2577  ;;  %v1822_v20 = vmul.f32 %v2576_v10, %v1818_v30 }
0x14e7   :  { %v1823_v28 = vmul.f32 %v2578_v23, %v1819_v37 }
0x1547   :  { %v1694_v7 = vpop.permute.xlu1 %1693 }
0x1548   :  { %v1696_v14 = vmul.f32 %v2574_v19, %v1694_v7  ;;  %v1827_v21 = vpop.permute.xlu0 %1826 }
0x1549   :  { %v1832_v22 = vmul.f32 %v2576_v10, %v1827_v21 }
0x154a   :  { %1698 = vrot.lane.b32.xlu0 %v1696_v14, %s2751_s1 }
0x154b   :  { %1836 = vrot.lane.b32.xlu1 %v1832_v22, %s2751_s1  ;;  %v1829_v25 = vpop.permute.xlu1 %1828 }
0x154c   :  { %v1833_v29 = vmul.f32 %v2578_v23, %v1829_v25 }
0x154e   :  { %1838 = vrot.lane.b32.xlu0 %v1833_v29, %s2751_s1 }
0x15bc   :  { %v1699_v17 = vpop.permute.xlu0 %1698 }
0x15bd   :  { %v1701_v40 = vadd.f32 %v1699_v17, %v1691_v15  ;;  %v1837_v33 = vpop.permute.xlu1 %1836 }
0x15be   :  { %v1842_v35 = vadd.f32 %v1837_v33, %v1822_v20 }
0x15bf   :  { %2579 = vtanh.f32 %v1701_v40 }
0x15c0   :  { %2581 = vtanh.f32 %v1842_v35  ;;  %v1839_v31 = vpop.permute.xlu0 %1838 }
0x15c1   :  { %v1843_v43 = vadd.f32 %v1839_v31, %v1823_v28 }
0x15c3   :  { %2583 = vtanh.f32 %v1843_v43 }
0x15c9   :  { %v2580_v45 = vpop.eup %2579 }
0x15ca   :  { %v2582_v46 = vpop.eup %2581  ;;  %1704 = vrot.lane.b32.xlu1 %v2580_v45, %s2741_s19 }
0x15cb   :  { %1848 = vrot.lane.b32.xlu0 %v2582_v46, %s2741_s19 }
0x15cd   :  { %v2584_v24 = vpop.eup %2583 }
0x15ce   :  { %1850 = vrot.lane.b32.xlu1 %v2584_v24, %s2741_s19 }
0x163c   :  { %v1705_v27 = vpop.permute.xlu1 %1704 }
0x163d   :  { %v1707_v32 = vmul.f32 %v2574_v19, %v1705_v27  ;;  %v1849_v41 = vpop.permute.xlu0 %1848 }
0x163e   :  { %v1854_v48 = vmul.f32 %v2576_v10, %v1849_v41 }
0x163f   :  { %v1708_v51 = vpack.c.bf16 %v1707_v32, %v1707_v32 }
0x1640   :  { %v1856_v52 = vpack.c.bf16 %v1854_v48, %v1854_v48  ;;  %v1851_v26 = vpop.permute.xlu1 %1850 }
0x1641   :  { %v1855_v36 = vmul.f32 %v2578_v23, %v1851_v26  ;;  %1750 = vrot.lane.b32.xlu0 %v1708_v51, %s2751_s1 }
0x1642   :  { %v1860_v42 = vunpack.c.l.b16 %v1856_v52 }
0x1643   :  { %v1857_v39 = vpack.c.bf16 %v1855_v36, %v1855_v36 }
0x1644   :  { %v1862_v54 = vrot.slane %v1860_v42, 7 }
0x1645   :  { %v1861_v50 = vunpack.c.l.b16 %v1857_v39 }
0x1647   :  { %v1863_v55 = vrot.slane %v1861_v50, 6 }
0x1649   :  { %v1864_v56 = vsel %vm239_vm2, %v1863_v55, %v1862_v54 }
0x164a   :  { %v1865_v57 = vpack.c.b16 %v1864_v56, %v1864_v56 }
0x164c   :  { %1866 = vrot.lane.b32.xlu1 %v1865_v57, %s2751_s1 }
0x16b3   :  { %v1751_v58 = vpop.permute.xlu0 %1750 }
0x16b4   :  { %2325 = vmatmul.mubr.msk.bf16.vlgmr.msra.gmra.mrb[28].mxu1 %vm256_vm3, %v1751_v58 }
0x16b5   :  { %2329 = vmatpush3.bf16.msra.mxu1 %v3173_v34  ;;  %2332 = vmatprep.mubr.msk.bf16.mxu1 %vm2750_vm0, %v2749_v0 }
0x16b6   :  { %2330 = vmatprep.subr.bf16.mxu1 %v2749_v0 }
0x16b9   :  { %2331 = vmatpush3.bf16.msra.mxu1 %v3179_v44 }
0x16be   :  { %v1867_v60 = vpop.permute.xlu1 %1866 }
0x16c0   :  { %2333 = vmatmul.mubr.msk.bf16.vlgmr.msra.gmra.mrb[28].mxu1 %vm256_vm3, %v1867_v60 }
0x1793   :  { %v1905_v62 = vpop.f32.mrb[28].mxu1 }
0x1794   :  { %v2350_v63 = vadd.f32 %v3204_v38, %v1905_v62  ;;  %v2334_v47 = vpop.f32.mrb[29].mxu1 }
0x1795   :  { %v1908_v49 = vpop.f32.mrb[30].mxu1 }
0x1796   :  { %2585 = vtanh.f32 %v2350_v63  ;;  %v2335_v53 = vpop.f32.mrb[31].mxu1  ;;  %v2078_v34 = vmul.f32 -1.442695, %v2350_v63 }
0x1798   :  { %2587 = vpow2.f32 %v2078_v34 }
0x17a0   :  { %v2586_v2 = vpop.eup %2585 }
0x17a1   :  { %1920 = vrot.lane.b32.xlu0 %v2586_v2, %s2741_s19 }
0x17a2   :  { %v2588_v3 = vpop.eup %2587 }
0x17a3   :  { %v1914_v4 = vadd.f32 1.0, %v2588_v3 }
0x17a5   :  { %2589 = vrcp.f32 %v1914_v4 }
0x17af   :  { %v2590_v5 = vpop.eup %2589 }
0x17b0   :  { %v1918_v8 = vmul.f32 %v2590_v5, %v1701_v40 }
0x1813   :  { %v1921_v44 = vpop.permute.xlu0 %1920 }
0x1814   :  { %v1923_v6 = vmul.f32 %v2590_v5, %v1921_v44 }
0x1816   :  { %1925 = vrot.lane.b32.xlu1 %v1923_v6, %s2751_s1 }
0x1888   :  { %v1926_v12 = vpop.permute.xlu1 %1925 }
0x1889   :  { %v1928_v38 = vadd.f32 %v1926_v12, %v1918_v8 }
0x188b   :  { %2591 = vtanh.f32 %v1928_v38 }
0x1895   :  { %v2592_v9 = vpop.eup %2591 }
0x1896   :  { %1931 = vrot.lane.b32.xlu0 %v2592_v9, %s2741_s19 }
0x1908   :  { %v1932_v59 = vpop.permute.xlu0 %1931 }
0x1909   :  { %v1934_v61 = vmul.f32 %v2590_v5, %v1932_v59 }
0x190b   :  { %v1935_v1 = vpack.c.bf16 %v1934_v61, %v1934_v61 }
0x190d   :  { %1948 = vrot.lane.b32.xlu1 %v1935_v1, %s2751_s1 }
0x197f   :  { %v1949_v16 = vpop.permute.xlu1 %1948 }
0x1980   :  { %2341 = vmatmul.mubr.msk.bf16.vlgmr.msra.gmra.mrb[32].mxu0 %vm256_vm3, %v1949_v16 }
0x1a53   :  { %v1999_v19 = vpop.f32.mrb[32].mxu0 }
0x1a54   :  { %v2000_v7 = vadd.f32 %v2079_v18, %v1999_v19  ;;  %v2342_v10 = vpop.f32.mrb[33].mxu0 }
0x1a55   :  { %v2002_v0 = vpop.f32.mrb[34].mxu0 }
0x1a56   :  { %2005 = vst [vmem:[#allocation11] sm:$0x3] %v2000_v7  ;;  %v2343_v14 = vpop.f32.mrb[35].mxu0 }
0x1a57   :  { %2721 = shalt.err (!%p2718_p2)
}
0x1a58   :  { %s2722_s25 = scalar_lea.hbm %s3301_s9, 32 }
0x1a59   :  { %p2723_p3 = scmp.ne.s32.totalorder %s3301_s9, %s2722_s25  ;;  %p2726_p4 = scmp.lt.u32.totalorder %s2722_s25, %s3301_s9 }
0x1a5b   :  { %p2728_p5 = pnand %p2726_p4, %p2723_p3 }
0x1a5d   :  { %2731 = shalt.err (!%p2728_p5)
}
0x1a5e   :  { %2015 = dma.vmem_to_hbm [thread:$0]  %s2013_s6, 32, %s3301_s9, [#allocation4]  }
0x1a5f   :  { %2738 = dma.done.wait [#allocation4], 32  }
0x1a60   :  { %2739 = vsyncadd [#allocation4], 4294967264 }
0x1a61   :  { %2019 = vsyncpa [#allocation3], 1 }
0x1a62   :  { %2020 = vsyncpa [#allocation6], 1 }
0x1a63   :  { %2021 = vsyncpa [#allocation9], 1 }
0x1a64   :  { %2022 = vsyncpa [#allocation4], 1 }

</bundles_post_ra>
